<compile_context>
chip_gen: v6e
topology: v6e:2x2x1
jax: 0.10.0
libtpu: 0.0.40
codegen_flags: <defaults>
</compile_context>

<pallas_src>
from typing import Dict, List, Tuple

import numpy as np
import jax
import jax.numpy as jnp
from jax.experimental import pallas as pl
from jax.experimental.pallas import tpu as pltpu


# ----------------------------- helpers -----------------------------

def _row_tiling(n: int, max_tile: int = 1024, split_threshold: int = 1024) -> Tuple[int, int]:
    """Balanced row tiling: (tile multiple of 8, padded row count = tile * nblocks)."""
    n = max(int(n), 1)
    num_blocks = max(1, -(-n // max_tile))
    if num_blocks == 1 and n >= split_threshold:
        num_blocks = 2          # give the 'parallel' axis >=2 steps (v7x: 2 TensorCores)
    tile = (-(-n // num_blocks) + 7) // 8 * 8
    return tile, tile * num_blocks


def _mish(x):
    # mish(x) = x * tanh(softplus(x)) = x * t(t+2) / (t(t+2) + 2),  t = exp(x).
    # Clamp the exp argument at 20: for x > 20, tanh(softplus(x)) == 1 in f32.
    t = jnp.exp(jnp.minimum(x, 20.0))
    num = t * (t + 2.0)
    return x * num / (num + 2.0)


# ----------------------------- single-input MLP kernel -----------------------------

def _mlp_kernel(x_ref, w1_ref, b1_ref, w2_ref, b2_ref, o_ref):
    x = x_ref[...]
    h = jnp.dot(x, w1_ref[...], preferred_element_type=jnp.float32) + b1_ref[...]
    z = x + _mish(h)                              # input + mish(residual(input))
    y = jnp.dot(z, w2_ref[...], preferred_element_type=jnp.float32) + b2_ref[...]
    o_ref[...] = y.astype(o_ref.dtype)


def mlp_pallas(x, params, max_tile=1024):
    """y = Linear2(x + mish(Linear1(x))) in one Pallas kernel, tiled over rows."""
    w1, b1, w2, b2 = params                       # w1:[D,D] b1:[1,D] w2:[D,Dout] b2:[1,Dout]
    n, din = x.shape
    dout = w2.shape[1]
    tile, n_pad = _row_tiling(n, max_tile)
    x_p = x if n_pad == n else jnp.pad(x, ((0, n_pad - n), (0, 0)))

    flops = 2 * n_pad * din * (din + dout)
    bytes_acc = 4 * (n_pad * (din + dout) + din * (din + dout) + din + dout)
    out = pl.pallas_call(
        _mlp_kernel,
        out_shape=jax.ShapeDtypeStruct((n_pad, dout), jnp.float32),
        grid_spec=pltpu.PrefetchScalarGridSpec(
            num_scalar_prefetch=0,
            grid=(n_pad // tile,),
            in_specs=[
                pl.BlockSpec((tile, din), lambda i: (i, 0)),
                pl.BlockSpec((din, din), lambda i: (0, 0)),
                pl.BlockSpec((1, din), lambda i: (0, 0)),
                pl.BlockSpec((din, dout), lambda i: (0, 0)),
                pl.BlockSpec((1, dout), lambda i: (0, 0)),
            ],
            out_specs=pl.BlockSpec((tile, dout), lambda i: (i, 0)),
        ),
        compiler_params=pltpu.CompilerParams(dimension_semantics=("parallel",)),
        cost_estimate=pl.CostEstimate(flops=flops, transcendentals=n_pad * din,
                                      bytes_accessed=bytes_acc),
    )(x_p, w1, b1, w2, b2)
    return out if n_pad == n else out[:n]


# ----------------------------- two-input (fused concat) MLP kernel -----------------------------

def _mlp2_kernel(a_ref, c_ref, w1_ref, b1_ref, w2_ref, b2_ref, o_ref):
    """MLP(concat([a, c], -1)) with the concat fused away via pre-split weight blocks."""
    a = a_ref[...]
    c = c_ref[...]
    ha = (jnp.dot(a, w1_ref[0, 0], preferred_element_type=jnp.float32)
          + jnp.dot(c, w1_ref[1, 0], preferred_element_type=jnp.float32) + b1_ref[0])
    hb = (jnp.dot(a, w1_ref[0, 1], preferred_element_type=jnp.float32)
          + jnp.dot(c, w1_ref[1, 1], preferred_element_type=jnp.float32) + b1_ref[1])
    za = a + _mish(ha)
    zb = c + _mish(hb)
    y = (jnp.dot(za, w2_ref[0, 0], preferred_element_type=jnp.float32)
         + jnp.dot(zb, w2_ref[1, 0], preferred_element_type=jnp.float32) + b2_ref[0])
    o_ref[...] = y.astype(o_ref.dtype)


def mlp2_pallas(a, c, block_params, max_tile=1024):
    """y = Linear2(cat(a,c) + mish(Linear1(cat(a,c)))) without materializing cat(a,c)."""
    w1b, b1b, w2b, b2b = block_params             # [2,2,E,E], [2,1,E], [2,1,E,E], [1,1,E]
    n, e = a.shape
    tile, n_pad = _row_tiling(n, max_tile)
    if n_pad != n:
        a = jnp.pad(a, ((0, n_pad - n), (0, 0)))
        c = jnp.pad(c, ((0, n_pad - n), (0, 0)))

    flops = 2 * n_pad * e * e * 6
    bytes_acc = 4 * (3 * n_pad * e + 6 * e * e + 3 * e)
    out = pl.pallas_call(
        _mlp2_kernel,
        out_shape=jax.ShapeDtypeStruct((n_pad, e), jnp.float32),
        grid_spec=pltpu.PrefetchScalarGridSpec(
            num_scalar_prefetch=0,
            grid=(n_pad // tile,),
            in_specs=[
                pl.BlockSpec((tile, e), lambda i: (i, 0)),
                pl.BlockSpec((tile, e), lambda i: (i, 0)),
                pl.BlockSpec((2, 2, e, e), lambda i: (0, 0, 0, 0)),
                pl.BlockSpec((2, 1, e), lambda i: (0, 0, 0)),
                pl.BlockSpec((2, 1, e, e), lambda i: (0, 0, 0, 0)),
                pl.BlockSpec((1, 1, e), lambda i: (0, 0, 0)),
            ],
            out_specs=pl.BlockSpec((tile, e), lambda i: (i, 0)),
        ),
        compiler_params=pltpu.CompilerParams(dimension_semantics=("parallel",)),
        cost_estimate=pl.CostEstimate(flops=flops, transcendentals=2 * n_pad * e,
                                      bytes_accessed=bytes_acc),
    )(a, c, w1b, b1b, w2b, b2b)
    return out if n_pad == n else out[:n]


# ----------------------------- relation MLP with fused gather -----------------------------

def _make_relation_kernel(arity: int, emb: int, fact_tile: int):
    def kernel(vals_ref, obj_ref, w1_ref, b1_ref, w2_ref, b2_ref, o_ref, *xs):
        base = pl.program_id(0) * (fact_tile * arity)
        # Fused gather: slab j holds obj[values[f*arity + j]] for the facts of this tile
        # (rows stay lane-dense; no [T, arity*E] tensor is ever built in HBM).
        for j in range(arity):
            def gather_body(f, carry, j=j):
                idx = vals_ref[base + f * arity + j]
                xs[j][pl.ds(f, 1), :] = obj_ref[pl.ds(idx, 1), :]
                return carry
            jax.lax.fori_loop(0, fact_tile, gather_body, 0)
        x = [xs[j][...] for j in range(arity)]
        # h_i = sum_j x_j @ W1[j,i] + b1[i];  z_i = x_i + mish(h_i)
        z = []
        for i_out in range(arity):
            h = b1_ref[i_out]
            for j in range(arity):
                h = h + jnp.dot(x[j], w1_ref[j, i_out], preferred_element_type=jnp.float32)
            z.append(x[i_out] + _mish(h))
        # y_i = sum_j z_j @ W2[j,i] + b2[i]
        for i_out in range(arity):
            y = b2_ref[i_out]
            for j in range(arity):
                y = y + jnp.dot(z[j], w2_ref[j, i_out], preferred_element_type=jnp.float32)
            o_ref[i_out] = y.astype(o_ref.dtype)
    return kernel


def relation_mlp_pallas(obj_pad, values, blocks, arity, emb, max_fact_tile=512):
    """Relation MLP over gathered object rows; returns ([arity, Tpad, E], T)."""
    w1b, b1b, w2b, b2b = blocks
    t = values.shape[0] // arity
    fact_tile, t_pad = _row_tiling(t, max_fact_tile)
    vals = values.astype(jnp.int32)
    if t_pad != t:
        vals = jnp.concatenate([vals, jnp.zeros(((t_pad - t) * arity,), jnp.int32)])
    n_rows = obj_pad.shape[0]

    d = arity * emb
    flops = 4 * t_pad * d * d
    bytes_acc = 4 * (2 * t_pad * d + n_rows * emb + 2 * d * d + 2 * d)
    out = pl.pallas_call(
        _make_relation_kernel(arity, emb, fact_tile),
        out_shape=jax.ShapeDtypeStruct((arity, t_pad, emb), jnp.float32),
        grid_spec=pltpu.PrefetchScalarGridSpec(
            num_scalar_prefetch=1,                # `values` lands in SMEM
            grid=(t_pad // fact_tile,),
            in_specs=[
                pl.BlockSpec((n_rows, emb), lambda i, v: (0, 0)),         # obj, VMEM-resident
                pl.BlockSpec((arity, arity, emb, emb), lambda i, v: (0, 0, 0, 0)),
                pl.BlockSpec((arity, 1, emb), lambda i, v: (0, 0, 0)),
                pl.BlockSpec((arity, arity, emb, emb), lambda i, v: (0, 0, 0, 0)),
                pl.BlockSpec((arity, 1, emb), lambda i, v: (0, 0, 0)),
            ],
            out_specs=pl.BlockSpec((arity, fact_tile, emb), lambda i, v: (0, i, 0)),
            scratch_shapes=[pltpu.VMEM((fact_tile, emb), jnp.float32)
                            for _ in range(arity)],
        ),
        compiler_params=pltpu.CompilerParams(
            dimension_semantics=("parallel",),
            vmem_limit_bytes=32 * 1024 * 1024),
        cost_estimate=pl.CostEstimate(flops=flops, transcendentals=t_pad * d,
                                      bytes_accessed=bytes_acc),
    )(vals, obj_pad, w1b, b1b, w2b, b2b)
    return out, t


_FUSED_GATHER_VMEM_LIMIT = 12 * 1024 * 1024      # double-buffered obj residency budget


def relation_mlp_apply(obj_pad, values, blocks, arity, emb):
    """Returns (out_rows [arity*T, E], idx_rows [arity*T]) in matching order."""
    if 2 * obj_pad.shape[0] * emb * 4 <= _FUSED_GATHER_VMEM_LIMIT:
        out, t = relation_mlp_pallas(obj_pad, values, blocks, arity, emb)
        out_rows = out[:, :t, :].reshape(arity * t, emb)        # drop padded facts
        idx_rows = values.reshape(t, arity).T.reshape(arity * t)
        return out_rows, idx_rows
    # Fallback for very large object tables (obj too big for VMEM residency):
    # XLA gather + row-tiled MLP.  TODO(synk): manual DMA-gather double-buffer kernel.
    w1b, b1b, w2b, b2b = blocks
    d = arity * emb
    w1 = jnp.transpose(w1b, (0, 2, 1, 3)).reshape(d, d)
    b1 = jnp.transpose(b1b, (1, 0, 2)).reshape(1, d)
    w2 = jnp.transpose(w2b, (0, 2, 1, 3)).reshape(d, d)
    b2 = jnp.transpose(b2b, (1, 0, 2)).reshape(1, d)
    t = values.shape[0] // arity
    gathered = obj_pad[values].reshape(t, d)
    out_rows = mlp_pallas(gathered, (w1, b1, w2, b2)).reshape(arity * t, emb)
    return out_rows, values


# ----------------------------- parameter init -----------------------------

def _init_linear(key, din, dout):
    kw, kb = jax.random.split(key)
    bound = float(din) ** -0.5
    w = jax.random.uniform(kw, (din, dout), jnp.float32, -bound, bound)
    b = jax.random.uniform(kb, (1, dout), jnp.float32, -bound, bound)
    return w, b


def _init_mlp_plain(key, din, dout):
    k1, k2 = jax.random.split(key)
    w1, b1 = _init_linear(k1, din, din)          # _residual: Linear(in, in)
    w2, b2 = _init_linear(k2, din, dout)         # _output:   Linear(in, out)
    return (w1, b1, w2, b2)


def _to_blocks(plain, n_in_blocks, n_out_blocks, emb):
    """Pre-split an MLP's weights into [E x E] blocks once (hoisted out of the kernels)."""
    w1, b1, w2, b2 = plain

    def wblk(w, ni, no):
        return w.reshape(ni, emb, no, emb).transpose(0, 2, 1, 3)

    def bblk(b, no):
        return b.reshape(1, no, emb).transpose(1, 0, 2)

    return (wblk(w1, n_in_blocks, n_in_blocks), bblk(b1, n_in_blocks),
            wblk(w2, n_in_blocks, n_out_blocks), bblk(b2, n_out_blocks))


def init_model(key, relations: List[Tuple[int, int]], emb: int):
    keys = jax.random.split(key, len(relations) + 3)
    rel_mlps = {}
    for (rel, arity), k in zip(relations, keys[:len(relations)]):
        if arity > 0:
            rel_mlps[rel] = _to_blocks(_init_mlp_plain(k, arity * emb, arity * emb),
                                       arity, arity, emb)
        else:
            rel_mlps[rel] = None
    return {
        "relation_mlps": rel_mlps,
        "update_mlp": _to_blocks(_init_mlp_plain(keys[-3], 2 * emb, emb), 2, 1, emb),
        "readout_mlp": _init_mlp_plain(keys[-2], emb, emb),
        "readout_update": _to_blocks(_init_mlp_plain(keys[-1], 2 * emb, emb), 2, 1, emb),
    }


# ----------------------------- model forward -----------------------------

def relation_message_passing(obj, relations_dict, rel_arities, params, emb):
    """One RelationMessagePassing layer on (row-padded) object embeddings."""
    outs = []
    for rel in sorted(rel_arities.keys()):
        arity = rel_arities[rel]
        blocks = params["relation_mlps"].get(rel)
        if blocks is None or rel not in relations_dict:
            continue
        values = relations_dict[rel].astype(jnp.int32)
        outs.append(relation_mlp_apply(obj, values, blocks, arity, emb))

    if outs:
        out_all = outs[0][0] if len(outs) == 1 else jnp.concatenate([o for o, _ in outs], 0)
        idx_all = outs[0][1] if len(outs) == 1 else jnp.concatenate([i for _, i in outs], 0)
        idx0 = outs[0][1]
        # scatter_reduce 'amax': first relation uses include_self=False, the rest True.
        # Collapsed to ONE scatter-max over everything + a "touched by first relation"
        # mask (rows only touched by later relations also compete against the initial 0).
        m_all = jnp.full_like(obj, -jnp.inf).at[idx_all].max(out_all)
        touched0 = jnp.zeros((obj.shape[0],), jnp.bool_).at[idx0].set(True)
        exps_max = jnp.where(touched0[:, None], m_all, jnp.maximum(m_all, 0.0))
        exps_max = jax.lax.stop_gradient(exps_max)
        # ONE scatter-add of exp(12*(out - max)) into exps_sum initialized to 1e-16.
        exps = jnp.exp(12.0 * (out_all - exps_max[idx_all]))
        exps_sum = jnp.full_like(obj, 1e-16).at[idx_all].add(exps)
    else:
        exps_max = jnp.zeros_like(obj)
        exps_sum = jnp.full_like(obj, 1e-16)

    max_msg = (1.0 / 12.0) * jnp.log(exps_sum) + exps_max
    # update_mlp(cat([max_msg, obj], 1)) with the concat fused into the kernel.
    return mlp2_pallas(max_msg, obj, params["update_mlp"])


def readout_pallas(obj_pad, graph_ids, num_graphs, params):
    # Per-graph sums (equivalent to the reference cumsum + diff) as one segment-sum
    # pass; padded rows land in segment `num_graphs`, which is discarded.
    sums = jax.ops.segment_sum(obj_pad, graph_ids, num_segments=num_graphs + 1)
    return mlp_pallas(sums[:num_graphs], params["readout_mlp"])


def make_forward(rel_arities: Dict[int, int], batch_num_objects: List[int],
                 emb: int, num_layers: int):
    n = int(sum(batch_num_objects))
    num_graphs = len(batch_num_objects)
    _, n_pad = _row_tiling(n)
    counts = [int(c) for c in batch_num_objects]
    gid = np.repeat(np.arange(num_graphs, dtype=np.int32), counts)
    if n_pad != n:
        gid = np.concatenate([gid, np.full(n_pad - n, num_graphs, np.int32)])
    graph_ids_const = jnp.asarray(gid)           # [n_pad] static constant

    def fwd(params, relations_dict, init_key):
        # _initialize_nodes: [zeros(E//2 + E%2) | randn(E//2)]
        zeros = jnp.zeros((n, emb // 2 + emb % 2), jnp.float32)
        rnd = jax.random.normal(init_key, (n, emb // 2), jnp.float32)
        obj = jnp.concatenate([zeros, rnd], axis=1)
        if n_pad != n:        # hoisted row padding; obj stays padded across all layers
            obj = jnp.pad(obj, ((0, n_pad - n), (0, 0)))

        for _ in range(num_layers):
            obj = relation_message_passing(obj, relations_dict, rel_arities, params, emb)
            ro = readout_pallas(obj, graph_ids_const, num_graphs, params)    # [B, E]
            # Broadcast per-graph readout to rows with a single clamped gather
            # (padded rows just replicate the last graph and are never read).
            readout_msg = ro[graph_ids_const]                                # [n_pad, E]
            # readout_update(cat([obj, readout_msg], 1)) with the concat fused away.
            obj = mlp2_pallas(obj, readout_msg, params["readout_update"])
        return obj[:n]

    return jax.jit(fwd)


# ----------------------------- demo -----------------------------

if __name__ == "__main__":
    EMB = 32
    NUM_LAYERS = 2
    RELATIONS = [(0, 1), (1, 2), (2, 0)]          # (relation_id, arity); arity 0 -> no MLP
    REL_ARITIES = {r: a for r, a in RELATIONS}
    BATCH_NUM_OBJECTS = [5, 7]                    # total N = 12 objects

    key = jax.random.PRNGKey(0)
    k_param, k_init = jax.random.split(key)
    params = init_model(k_param, RELATIONS, EMB)

    # relation -> flat object-index tensor (arity-sized tuples flattened)
    relations_dict = {
        0: jnp.array([0, 2, 4, 6, 8, 10, 11], dtype=jnp.int32),                        # 7 unary facts
        1: jnp.array([0, 1, 1, 2, 3, 4, 5, 6, 7, 8, 9, 10, 10, 11], dtype=jnp.int32),  # 7 binary facts
    }

    forward = make_forward(REL_ARITIES, BATCH_NUM_OBJECTS, EMB, NUM_LAYERS)
    out = forward(params, relations_dict, k_init)
    out = jax.block_until_ready(out)
    assert out.shape == (sum(BATCH_NUM_OBJECTS), EMB)
    assert bool(jnp.all(jnp.isfinite(out)))
    print("KERNEL_OK")
</pallas_src>

<mosaic_0001>
module attributes {stable_mosaic.version = 11 : i64} {
  func.func @kernel(%arg0: i32, %arg1: memref<8xi32, #tpu.memory_space<smem>>, %arg2: memref<16x32xf32, #tpu.memory_space<vmem>>, %arg3: memref<1x1x32x32xf32, #tpu.memory_space<vmem>>, %arg4: memref<1x1x32xf32, #tpu.memory_space<vmem>>, %arg5: memref<1x1x32x32xf32, #tpu.memory_space<vmem>>, %arg6: memref<1x1x32xf32, #tpu.memory_space<vmem>>, %arg7: memref<1x8x32xf32, #tpu.memory_space<vmem>>, %arg8: memref<8x32xf32, #tpu.memory_space<vmem>>) attributes {dimension_semantics = [#tpu.dimension_semantics<parallel>], iteration_bounds = array<i64: 1>, scalar_prefetch = 1 : i64, scratch_operands = 1 : i64, tpu.core_type = #tpu.core_type<tc>, window_params = [{pipeline_mode = #tpu.pipeline_mode<synchronous>, transform_indices = @transform_0, window_bounds = array<i64: 16, 32>}, {pipeline_mode = #tpu.pipeline_mode<synchronous>, transform_indices = @transform_1, window_bounds = array<i64: 1, 1, 32, 32>}, {pipeline_mode = #tpu.pipeline_mode<synchronous>, transform_indices = @transform_2, window_bounds = array<i64: 1, 1, 32>}, {pipeline_mode = #tpu.pipeline_mode<synchronous>, transform_indices = @transform_3, window_bounds = array<i64: 1, 1, 32, 32>}, {pipeline_mode = #tpu.pipeline_mode<synchronous>, transform_indices = @transform_4, window_bounds = array<i64: 1, 1, 32>}, {transform_indices = @transform_5, window_bounds = array<i64: 1, 8, 32>}]} {
    %c8_i32 = arith.constant 8 : i32
    %0 = arith.muli %arg0, %c8_i32 : i32
    %c0_i32 = arith.constant 0 : i32
    %c8_i32_0 = arith.constant 8 : i32
    %1 = arith.addi %c0_i32, %c8_i32_0 : i32
    %c1_i32 = arith.constant 1 : i32
    scf.for %arg9 = %c0_i32 to %1 step %c1_i32  : i32 {
      %c1_i32_24 = arith.constant 1 : i32
      %31 = arith.muli %arg9, %c1_i32_24 : i32
      %32 = arith.addi %0, %31 : i32
      %c0_i32_25 = arith.constant 0 : i32
      %33 = arith.addi %32, %c0_i32_25 : i32
      %34 = arith.index_cast %33 : i32 to index
      %35 = memref.load %arg1[%34] : memref<8xi32, #tpu.memory_space<smem>>
      %36 = arith.index_cast %35 : i32 to index
      %c0_26 = arith.constant 0 : index
      %37 = vector.load %arg2[%36, %c0_26] : memref<16x32xf32, #tpu.memory_space<vmem>>, vector<1x32xf32>
      %38 = arith.index_cast %arg9 : i32 to index
      %c0_27 = arith.constant 0 : index
      %39 = vector.load %arg8[%38, %c0_27] : memref<8x32xf32, #tpu.memory_space<vmem>>, vector<1x32xf32>
      tpu.vector_store %arg8[%38, %c0_27], %37 {strides = array<i32>} : memref<8x32xf32, #tpu.memory_space<vmem>>, vector<1x32xf32>,
    }
    %c8_i32_1 = arith.constant 8 : i32
    %c0 = arith.constant 0 : index
    %c0_2 = arith.constant 0 : index
    %2 = vector.load %arg8[%c0, %c0_2] : memref<8x32xf32, #tpu.memory_space<vmem>>, vector<8x32xf32>
    %c0_3 = arith.constant 0 : index
    %c0_4 = arith.constant 0 : index
    %c0_5 = arith.constant 0 : index
    %3 = vector.load %arg4[%c0_3, %c0_4, %c0_5] : memref<1x1x32xf32, #tpu.memory_space<vmem>>, vector<1x1x32xf32>
    %4 = vector.shape_cast %3 : vector<1x1x32xf32> to vector<1x32xf32>
    %c0_6 = arith.constant 0 : index
    %c0_7 = arith.constant 0 : index
    %c0_8 = arith.constant 0 : index
    %c0_9 = arith.constant 0 : index
    %5 = vector.load %arg3[%c0_6, %c0_7, %c0_8, %c0_9] : memref<1x1x32x32xf32, #tpu.memory_space<vmem>>, vector<1x1x32x32xf32>
    %6 = vector.shape_cast %5 : vector<1x1x32x32xf32> to vector<32x32xf32>
    %cst = arith.constant dense<0.000000e+00> : vector<8x32xf32>
    %7 = tpu.matmul %2, %6, %cst {dimension_numbers = #tpu.dot_dimension_numbers<[1], [0], [0], [1], [0, 0, 1, 1], [], []>} : vector<8x32xf32>, vector<32x32xf32>, vector<8x32xf32> -> vector<8x32xf32>
    %8 = vector.broadcast %4 : vector<1x32xf32> to vector<8x32xf32>
    %9 = arith.addf %8, %7 : vector<8x32xf32>
    %cst_10 = arith.constant 2.000000e+01 : f32
    %10 = vector.broadcast %cst_10 : f32 to vector<8x32xf32>
    %11 = arith.minimumf %9, %10 : vector<8x32xf32>
    %12 = math.exp %11 : vector<8x32xf32>
    %cst_11 = arith.constant 2.000000e+00 : f32
    %13 = vector.broadcast %cst_11 : f32 to vector<8x32xf32>
    %14 = arith.addf %12, %13 : vector<8x32xf32>
    %15 = arith.mulf %12, %14 : vector<8x32xf32>
    %16 = arith.mulf %9, %15 : vector<8x32xf32>
    %cst_12 = arith.constant 2.000000e+00 : f32
    %17 = vector.broadcast %cst_12 : f32 to vector<8x32xf32>
    %18 = arith.addf %15, %17 : vector<8x32xf32>
    %19 = arith.divf %16, %18 : vector<8x32xf32>
    %20 = arith.addf %2, %19 : vector<8x32xf32>
    %c0_13 = arith.constant 0 : index
    %c0_14 = arith.constant 0 : index
    %c0_15 = arith.constant 0 : index
    %21 = vector.load %arg6[%c0_13, %c0_14, %c0_15] : memref<1x1x32xf32, #tpu.memory_space<vmem>>, vector<1x1x32xf32>
    %22 = vector.shape_cast %21 : vector<1x1x32xf32> to vector<1x32xf32>
    %c0_16 = arith.constant 0 : index
    %c0_17 = arith.constant 0 : index
    %c0_18 = arith.constant 0 : index
    %c0_19 = arith.constant 0 : index
    %23 = vector.load %arg5[%c0_16, %c0_17, %c0_18, %c0_19] : memref<1x1x32x32xf32, #tpu.memory_space<vmem>>, vector<1x1x32x32xf32>
    %24 = vector.shape_cast %23 : vector<1x1x32x32xf32> to vector<32x32xf32>
    %cst_20 = arith.constant dense<0.000000e+00> : vector<8x32xf32>
    %25 = tpu.matmul %20, %24, %cst_20 {dimension_numbers = #tpu.dot_dimension_numbers<[1], [0], [0], [1], [0, 0, 1, 1], [], []>} : vector<8x32xf32>, vector<32x32xf32>, vector<8x32xf32> -> vector<8x32xf32>
    %26 = vector.broadcast %22 : vector<1x32xf32> to vector<8x32xf32>
    %27 = arith.addf %26, %25 : vector<8x32xf32>
    %c0_21 = arith.constant 0 : index
    %c0_22 = arith.constant 0 : index
    %c0_23 = arith.constant 0 : index
    %28 = vector.load %arg7[%c0_21, %c0_22, %c0_23] : memref<1x8x32xf32, #tpu.memory_space<vmem>>, vector<1x8x32xf32>
    %29 = vector.shape_cast %28 : vector<1x8x32xf32> to vector<8x32xf32>
    %30 = vector.shape_cast %27 : vector<8x32xf32> to vector<1x8x32xf32>
    tpu.vector_store %arg7[%c0_21, %c0_22, %c0_23], %30 {strides = array<i32>} : memref<1x8x32xf32, #tpu.memory_space<vmem>>, vector<1x8x32xf32>,
    return
  }
  func.func @transform_0(%arg0: i32, %arg1: memref<8xi32, #tpu.memory_space<smem>>) -> (i32, i32) {
    %c0_i32 = arith.constant 0 : i32
    %c0_i32_0 = arith.constant 0 : i32
    %c0_i32_1 = arith.constant 0 : i32
    return %c0_i32, %c0_i32_0 : i32, i32
  }
  func.func @transform_1(%arg0: i32, %arg1: memref<8xi32, #tpu.memory_space<smem>>) -> (i32, i32, i32, i32) {
    %c0_i32 = arith.constant 0 : i32
    %c0_i32_0 = arith.constant 0 : i32
    %c0_i32_1 = arith.constant 0 : i32
    %c0_i32_2 = arith.constant 0 : i32
    %c0_i32_3 = arith.constant 0 : i32
    return %c0_i32, %c0_i32_0, %c0_i32_1, %c0_i32_2 : i32, i32, i32, i32
  }
  func.func @transform_2(%arg0: i32, %arg1: memref<8xi32, #tpu.memory_space<smem>>) -> (i32, i32, i32) {
    %c0_i32 = arith.constant 0 : i32
    %c0_i32_0 = arith.constant 0 : i32
    %c0_i32_1 = arith.constant 0 : i32
    %c0_i32_2 = arith.constant 0 : i32
    return %c0_i32, %c0_i32_0, %c0_i32_1 : i32, i32, i32
  }
  func.func @transform_3(%arg0: i32, %arg1: memref<8xi32, #tpu.memory_space<smem>>) -> (i32, i32, i32, i32) {
    %c0_i32 = arith.constant 0 : i32
    %c0_i32_0 = arith.constant 0 : i32
    %c0_i32_1 = arith.constant 0 : i32
    %c0_i32_2 = arith.constant 0 : i32
    %c0_i32_3 = arith.constant 0 : i32
    return %c0_i32, %c0_i32_0, %c0_i32_1, %c0_i32_2 : i32, i32, i32, i32
  }
  func.func @transform_4(%arg0: i32, %arg1: memref<8xi32, #tpu.memory_space<smem>>) -> (i32, i32, i32) {
    %c0_i32 = arith.constant 0 : i32
    %c0_i32_0 = arith.constant 0 : i32
    %c0_i32_1 = arith.constant 0 : i32
    %c0_i32_2 = arith.constant 0 : i32
    return %c0_i32, %c0_i32_0, %c0_i32_1 : i32, i32, i32
  }
  func.func @transform_5(%arg0: i32, %arg1: memref<8xi32, #tpu.memory_space<smem>>) -> (i32, i32, i32) {
    %c0_i32 = arith.constant 0 : i32
    %c0_i32_0 = arith.constant 0 : i32
    %c0_i32_1 = arith.constant 0 : i32
    return %c0_i32, %arg0, %c0_i32_0 : i32, i32, i32
  }
}

module attributes {stable_mosaic.version = 11 : i64} {
  func.func @kernel(%arg0: i32, %arg1: memref<16xi32, #tpu.memory_space<smem>>, %arg2: memref<16x32xf32, #tpu.memory_space<vmem>>, %arg3: memref<2x2x32x32xf32, #tpu.memory_space<vmem>>, %arg4: memref<2x1x32xf32, #tpu.memory_space<vmem>>, %arg5: memref<2x2x32x32xf32, #tpu.memory_space<vmem>>, %arg6: memref<2x1x32xf32, #tpu.memory_space<vmem>>, %arg7: memref<2x8x32xf32, #tpu.memory_space<vmem>>, %arg8: memref<8x32xf32, #tpu.memory_space<vmem>>, %arg9: memref<8x32xf32, #tpu.memory_space<vmem>>) attributes {dimension_semantics = [#tpu.dimension_semantics<parallel>], iteration_bounds = array<i64: 1>, scalar_prefetch = 1 : i64, scratch_operands = 2 : i64, tpu.core_type = #tpu.core_type<tc>, window_params = [{pipeline_mode = #tpu.pipeline_mode<synchronous>, transform_indices = @transform_0, window_bounds = array<i64: 16, 32>}, {pipeline_mode = #tpu.pipeline_mode<synchronous>, transform_indices = @transform_1, window_bounds = array<i64: 2, 2, 32, 32>}, {pipeline_mode = #tpu.pipeline_mode<synchronous>, transform_indices = @transform_2, window_bounds = array<i64: 2, 1, 32>}, {pipeline_mode = #tpu.pipeline_mode<synchronous>, transform_indices = @transform_3, window_bounds = array<i64: 2, 2, 32, 32>}, {pipeline_mode = #tpu.pipeline_mode<synchronous>, transform_indices = @transform_4, window_bounds = array<i64: 2, 1, 32>}, {transform_indices = @transform_5, window_bounds = array<i64: 2, 8, 32>}]} {
    %c16_i32 = arith.constant 16 : i32
    %0 = arith.muli %arg0, %c16_i32 : i32
    %c0_i32 = arith.constant 0 : i32
    %c8_i32 = arith.constant 8 : i32
    %1 = arith.addi %c0_i32, %c8_i32 : i32
    %c1_i32 = arith.constant 1 : i32
    scf.for %arg10 = %c0_i32 to %1 step %c1_i32  : i32 {
      %c2_i32 = arith.constant 2 : i32
      %77 = arith.muli %arg10, %c2_i32 : i32
      %78 = arith.addi %0, %77 : i32
      %c0_i32_70 = arith.constant 0 : i32
      %79 = arith.addi %78, %c0_i32_70 : i32
      %80 = arith.index_cast %79 : i32 to index
      %81 = memref.load %arg1[%80] : memref<16xi32, #tpu.memory_space<smem>>
      %82 = arith.index_cast %81 : i32 to index
      %c0_71 = arith.constant 0 : index
      %83 = vector.load %arg2[%82, %c0_71] : memref<16x32xf32, #tpu.memory_space<vmem>>, vector<1x32xf32>
      %84 = arith.index_cast %arg10 : i32 to index
      %c0_72 = arith.constant 0 : index
      %85 = vector.load %arg8[%84, %c0_72] : memref<8x32xf32, #tpu.memory_space<vmem>>, vector<1x32xf32>
      tpu.vector_store %arg8[%84, %c0_72], %83 {strides = array<i32>} : memref<8x32xf32, #tpu.memory_space<vmem>>, vector<1x32xf32>,
    }
    %c8_i32_0 = arith.constant 8 : i32
    %c0_i32_1 = arith.constant 0 : i32
    %c8_i32_2 = arith.constant 8 : i32
    %2 = arith.addi %c0_i32_1, %c8_i32_2 : i32
    %c1_i32_3 = arith.constant 1 : i32
    scf.for %arg10 = %c0_i32_1 to %2 step %c1_i32_3  : i32 {
      %c2_i32 = arith.constant 2 : i32
      %77 = arith.muli %arg10, %c2_i32 : i32
      %78 = arith.addi %0, %77 : i32
      %c1_i32_70 = arith.constant 1 : i32
      %79 = arith.addi %78, %c1_i32_70 : i32
      %80 = arith.index_cast %79 : i32 to index
      %81 = memref.load %arg1[%80] : memref<16xi32, #tpu.memory_space<smem>>
      %82 = arith.index_cast %81 : i32 to index
      %c0_71 = arith.constant 0 : index
      %83 = vector.load %arg2[%82, %c0_71] : memref<16x32xf32, #tpu.memory_space<vmem>>, vector<1x32xf32>
      %84 = arith.index_cast %arg10 : i32 to index
      %c0_72 = arith.constant 0 : index
      %85 = vector.load %arg9[%84, %c0_72] : memref<8x32xf32, #tpu.memory_space<vmem>>, vector<1x32xf32>
      tpu.vector_store %arg9[%84, %c0_72], %83 {strides = array<i32>} : memref<8x32xf32, #tpu.memory_space<vmem>>, vector<1x32xf32>,
    }
    %c8_i32_4 = arith.constant 8 : i32
    %c0 = arith.constant 0 : index
    %c0_5 = arith.constant 0 : index
    %3 = vector.load %arg8[%c0, %c0_5] : memref<8x32xf32, #tpu.memory_space<vmem>>, vector<8x32xf32>
    %c0_6 = arith.constant 0 : index
    %c0_7 = arith.constant 0 : index
    %4 = vector.load %arg9[%c0_6, %c0_7] : memref<8x32xf32, #tpu.memory_space<vmem>>, vector<8x32xf32>
    %c0_8 = arith.constant 0 : index
    %c0_9 = arith.constant 0 : index
    %c0_10 = arith.constant 0 : index
    %5 = vector.load %arg4[%c0_8, %c0_9, %c0_10] : memref<2x1x32xf32, #tpu.memory_space<vmem>>, vector<1x1x32xf32>
    %6 = vector.shape_cast %5 : vector<1x1x32xf32> to vector<1x32xf32>
    %c0_11 = arith.constant 0 : index
    %c0_12 = arith.constant 0 : index
    %c0_13 = arith.constant 0 : index
    %c0_14 = arith.constant 0 : index
    %7 = vector.load %arg3[%c0_11, %c0_12, %c0_13, %c0_14] : memref<2x2x32x32xf32, #tpu.memory_space<vmem>>, vector<1x1x32x32xf32>
    %8 = vector.shape_cast %7 : vector<1x1x32x32xf32> to vector<32x32xf32>
    %cst = arith.constant dense<0.000000e+00> : vector<8x32xf32>
    %9 = tpu.matmul %3, %8, %cst {dimension_numbers = #tpu.dot_dimension_numbers<[1], [0], [0], [1], [0, 0, 1, 1], [], []>} : vector<8x32xf32>, vector<32x32xf32>, vector<8x32xf32> -> vector<8x32xf32>
    %10 = vector.broadcast %6 : vector<1x32xf32> to vector<8x32xf32>
    %11 = arith.addf %10, %9 : vector<8x32xf32>
    %c1 = arith.constant 1 : index
    %c0_15 = arith.constant 0 : index
    %c0_16 = arith.constant 0 : index
    %c0_17 = arith.constant 0 : index
    %12 = vector.load %arg3[%c1, %c0_15, %c0_16, %c0_17] : memref<2x2x32x32xf32, #tpu.memory_space<vmem>>, vector<1x1x32x32xf32>
    %13 = vector.shape_cast %12 : vector<1x1x32x32xf32> to vector<32x32xf32>
    %cst_18 = arith.constant dense<0.000000e+00> : vector<8x32xf32>
    %14 = tpu.matmul %4, %13, %cst_18 {dimension_numbers = #tpu.dot_dimension_numbers<[1], [0], [0], [1], [0, 0, 1, 1], [], []>} : vector<8x32xf32>, vector<32x32xf32>, vector<8x32xf32> -> vector<8x32xf32>
    %15 = arith.addf %11, %14 : vector<8x32xf32>
    %cst_19 = arith.constant 2.000000e+01 : f32
    %16 = vector.broadcast %cst_19 : f32 to vector<8x32xf32>
    %17 = arith.minimumf %15, %16 : vector<8x32xf32>
    %18 = math.exp %17 : vector<8x32xf32>
    %cst_20 = arith.constant 2.000000e+00 : f32
    %19 = vector.broadcast %cst_20 : f32 to vector<8x32xf32>
    %20 = arith.addf %18, %19 : vector<8x32xf32>
    %21 = arith.mulf %18, %20 : vector<8x32xf32>
    %22 = arith.mulf %15, %21 : vector<8x32xf32>
    %cst_21 = arith.constant 2.000000e+00 : f32
    %23 = vector.broadcast %cst_21 : f32 to vector<8x32xf32>
    %24 = arith.addf %21, %23 : vector<8x32xf32>
    %25 = arith.divf %22, %24 : vector<8x32xf32>
    %26 = arith.addf %3, %25 : vector<8x32xf32>
    %c1_22 = arith.constant 1 : index
    %c0_23 = arith.constant 0 : index
    %c0_24 = arith.constant 0 : index
    %27 = vector.load %arg4[%c1_22, %c0_23, %c0_24] : memref<2x1x32xf32, #tpu.memory_space<vmem>>, vector<1x1x32xf32>
    %28 = vector.shape_cast %27 : vector<1x1x32xf32> to vector<1x32xf32>
    %c0_25 = arith.constant 0 : index
    %c1_26 = arith.constant 1 : index
    %c0_27 = arith.constant 0 : index
    %c0_28 = arith.constant 0 : index
    %29 = vector.load %arg3[%c0_25, %c1_26, %c0_27, %c0_28] : memref<2x2x32x32xf32, #tpu.memory_space<vmem>>, vector<1x1x32x32xf32>
    %30 = vector.shape_cast %29 : vector<1x1x32x32xf32> to vector<32x32xf32>
    %cst_29 = arith.constant dense<0.000000e+00> : vector<8x32xf32>
    %31 = tpu.matmul %3, %30, %cst_29 {dimension_numbers = #tpu.dot_dimension_numbers<[1], [0], [0], [1], [0, 0, 1, 1], [], []>} : vector<8x32xf32>, vector<32x32xf32>, vector<8x32xf32> -> vector<8x32xf32>
    %32 = vector.broadcast %28 : vector<1x32xf32> to vector<8x32xf32>
    %33 = arith.addf %32, %31 : vector<8x32xf32>
    %c1_30 = arith.constant 1 : index
    %c1_31 = arith.constant 1 : index
    %c0_32 = arith.constant 0 : index
    %c0_33 = arith.constant 0 : index
    %34 = vector.load %arg3[%c1_30, %c1_31, %c0_32, %c0_33] : memref<2x2x32x32xf32, #tpu.memory_space<vmem>>, vector<1x1x32x32xf32>
    %35 = vector.shape_cast %34 : vector<1x1x32x32xf32> to vector<32x32xf32>
    %cst_34 = arith.constant dense<0.000000e+00> : vector<8x32xf32>
    %36 = tpu.matmul %4, %35, %cst_34 {dimension_numbers = #tpu.dot_dimension_numbers<[1], [0], [0], [1], [0, 0, 1, 1], [], []>} : vector<8x32xf32>, vector<32x32xf32>, vector<8x32xf32> -> vector<8x32xf32>
    %37 = arith.addf %33, %36 : vector<8x32xf32>
    %cst_35 = arith.constant 2.000000e+01 : f32
    %38 = vector.broadcast %cst_35 : f32 to vector<8x32xf32>
    %39 = arith.minimumf %37, %38 : vector<8x32xf32>
    %40 = math.exp %39 : vector<8x32xf32>
    %cst_36 = arith.constant 2.000000e+00 : f32
    %41 = vector.broadcast %cst_36 : f32 to vector<8x32xf32>
    %42 = arith.addf %40, %41 : vector<8x32xf32>
    %43 = arith.mulf %40, %42 : vector<8x32xf32>
    %44 = arith.mulf %37, %43 : vector<8x32xf32>
    %cst_37 = arith.constant 2.000000e+00 : f32
    %45 = vector.broadcast %cst_37 : f32 to vector<8x32xf32>
    %46 = arith.addf %43, %45 : vector<8x32xf32>
    %47 = arith.divf %44, %46 : vector<8x32xf32>
    %48 = arith.addf %4, %47 : vector<8x32xf32>
    %c0_38 = arith.constant 0 : index
    %c0_39 = arith.constant 0 : index
    %c0_40 = arith.constant 0 : index
    %49 = vector.load %arg6[%c0_38, %c0_39, %c0_40] : memref<2x1x32xf32, #tpu.memory_space<vmem>>, vector<1x1x32xf32>
    %50 = vector.shape_cast %49 : vector<1x1x32xf32> to vector<1x32xf32>
    %c0_41 = arith.constant 0 : index
    %c0_42 = arith.constant 0 : index
    %c0_43 = arith.constant 0 : index
    %c0_44 = arith.constant 0 : index
    %51 = vector.load %arg5[%c0_41, %c0_42, %c0_43, %c0_44] : memref<2x2x32x32xf32, #tpu.memory_space<vmem>>, vector<1x1x32x32xf32>
    %52 = vector.shape_cast %51 : vector<1x1x32x32xf32> to vector<32x32xf32>
    %cst_45 = arith.constant dense<0.000000e+00> : vector<8x32xf32>
    %53 = tpu.matmul %26, %52, %cst_45 {dimension_numbers = #tpu.dot_dimension_numbers<[1], [0], [0], [1], [0, 0, 1, 1], [], []>} : vector<8x32xf32>, vector<32x32xf32>, vector<8x32xf32> -> vector<8x32xf32>
    %54 = vector.broadcast %50 : vector<1x32xf32> to vector<8x32xf32>
    %55 = arith.addf %54, %53 : vector<8x32xf32>
    %c1_46 = arith.constant 1 : index
    %c0_47 = arith.constant 0 : index
    %c0_48 = arith.constant 0 : index
    %c0_49 = arith.constant 0 : index
    %56 = vector.load %arg5[%c1_46, %c0_47, %c0_48, %c0_49] : memref<2x2x32x32xf32, #tpu.memory_space<vmem>>, vector<1x1x32x32xf32>
    %57 = vector.shape_cast %56 : vector<1x1x32x32xf32> to vector<32x32xf32>
    %cst_50 = arith.constant dense<0.000000e+00> : vector<8x32xf32>
    %58 = tpu.matmul %48, %57, %cst_50 {dimension_numbers = #tpu.dot_dimension_numbers<[1], [0], [0], [1], [0, 0, 1, 1], [], []>} : vector<8x32xf32>, vector<32x32xf32>, vector<8x32xf32> -> vector<8x32xf32>
    %59 = arith.addf %55, %58 : vector<8x32xf32>
    %c0_51 = arith.constant 0 : index
    %c0_52 = arith.constant 0 : index
    %c0_53 = arith.constant 0 : index
    %60 = vector.load %arg7[%c0_51, %c0_52, %c0_53] : memref<2x8x32xf32, #tpu.memory_space<vmem>>, vector<1x8x32xf32>
    %61 = vector.shape_cast %60 : vector<1x8x32xf32> to vector<8x32xf32>
    %62 = vector.shape_cast %59 : vector<8x32xf32> to vector<1x8x32xf32>
    tpu.vector_store %arg7[%c0_51, %c0_52, %c0_53], %62 {strides = array<i32>} : memref<2x8x32xf32, #tpu.memory_space<vmem>>, vector<1x8x32xf32>,
    %c1_54 = arith.constant 1 : index
    %c0_55 = arith.constant 0 : index
    %c0_56 = arith.constant 0 : index
    %63 = vector.load %arg6[%c1_54, %c0_55, %c0_56] : memref<2x1x32xf32, #tpu.memory_space<vmem>>, vector<1x1x32xf32>
    %64 = vector.shape_cast %63 : vector<1x1x32xf32> to vector<1x32xf32>
    %c0_57 = arith.constant 0 : index
    %c1_58 = arith.constant 1 : index
    %c0_59 = arith.constant 0 : index
    %c0_60 = arith.constant 0 : index
    %65 = vector.load %arg5[%c0_57, %c1_58, %c0_59, %c0_60] : memref<2x2x32x32xf32, #tpu.memory_space<vmem>>, vector<1x1x32x32xf32>
    %66 = vector.shape_cast %65 : vector<1x1x32x32xf32> to vector<32x32xf32>
    %cst_61 = arith.constant dense<0.000000e+00> : vector<8x32xf32>
    %67 = tpu.matmul %26, %66, %cst_61 {dimension_numbers = #tpu.dot_dimension_numbers<[1], [0], [0], [1], [0, 0, 1, 1], [], []>} : vector<8x32xf32>, vector<32x32xf32>, vector<8x32xf32> -> vector<8x32xf32>
    %68 = vector.broadcast %64 : vector<1x32xf32> to vector<8x32xf32>
    %69 = arith.addf %68, %67 : vector<8x32xf32>
    %c1_62 = arith.constant 1 : index
    %c1_63 = arith.constant 1 : index
    %c0_64 = arith.constant 0 : index
    %c0_65 = arith.constant 0 : index
    %70 = vector.load %arg5[%c1_62, %c1_63, %c0_64, %c0_65] : memref<2x2x32x32xf32, #tpu.memory_space<vmem>>, vector<1x1x32x32xf32>
    %71 = vector.shape_cast %70 : vector<1x1x32x32xf32> to vector<32x32xf32>
    %cst_66 = arith.constant dense<0.000000e+00> : vector<8x32xf32>
    %72 = tpu.matmul %48, %71, %cst_66 {dimension_numbers = #tpu.dot_dimension_numbers<[1], [0], [0], [1], [0, 0, 1, 1], [], []>} : vector<8x32xf32>, vector<32x32xf32>, vector<8x32xf32> -> vector<8x32xf32>
    %73 = arith.addf %69, %72 : vector<8x32xf32>
    %c1_67 = arith.constant 1 : index
    %c0_68 = arith.constant 0 : index
    %c0_69 = arith.constant 0 : index
    %74 = vector.load %arg7[%c1_67, %c0_68, %c0_69] : memref<2x8x32xf32, #tpu.memory_space<vmem>>, vector<1x8x32xf32>
    %75 = vector.shape_cast %74 : vector<1x8x32xf32> to vector<8x32xf32>
    %76 = vector.shape_cast %73 : vector<8x32xf32> to vector<1x8x32xf32>
    tpu.vector_store %arg7[%c1_67, %c0_68, %c0_69], %76 {strides = array<i32>} : memref<2x8x32xf32, #tpu.memory_space<vmem>>, vector<1x8x32xf32>,
    return
  }
  func.func @transform_0(%arg0: i32, %arg1: memref<16xi32, #tpu.memory_space<smem>>) -> (i32, i32) {
    %c0_i32 = arith.constant 0 : i32
    %c0_i32_0 = arith.constant 0 : i32
    %c0_i32_1 = arith.constant 0 : i32
    return %c0_i32, %c0_i32_0 : i32, i32
  }
  func.func @transform_1(%arg0: i32, %arg1: memref<16xi32, #tpu.memory_space<smem>>) -> (i32, i32, i32, i32) {
    %c0_i32 = arith.constant 0 : i32
    %c0_i32_0 = arith.constant 0 : i32
    %c0_i32_1 = arith.constant 0 : i32
    %c0_i32_2 = arith.constant 0 : i32
    %c0_i32_3 = arith.constant 0 : i32
    return %c0_i32, %c0_i32_0, %c0_i32_1, %c0_i32_2 : i32, i32, i32, i32
  }
  func.func @transform_2(%arg0: i32, %arg1: memref<16xi32, #tpu.memory_space<smem>>) -> (i32, i32, i32) {
    %c0_i32 = arith.constant 0 : i32
    %c0_i32_0 = arith.constant 0 : i32
    %c0_i32_1 = arith.constant 0 : i32
    %c0_i32_2 = arith.constant 0 : i32
    return %c0_i32, %c0_i32_0, %c0_i32_1 : i32, i32, i32
  }
  func.func @transform_3(%arg0: i32, %arg1: memref<16xi32, #tpu.memory_space<smem>>) -> (i32, i32, i32, i32) {
    %c0_i32 = arith.constant 0 : i32
    %c0_i32_0 = arith.constant 0 : i32
    %c0_i32_1 = arith.constant 0 : i32
    %c0_i32_2 = arith.constant 0 : i32
    %c0_i32_3 = arith.constant 0 : i32
    return %c0_i32, %c0_i32_0, %c0_i32_1, %c0_i32_2 : i32, i32, i32, i32
  }
  func.func @transform_4(%arg0: i32, %arg1: memref<16xi32, #tpu.memory_space<smem>>) -> (i32, i32, i32) {
    %c0_i32 = arith.constant 0 : i32
    %c0_i32_0 = arith.constant 0 : i32
    %c0_i32_1 = arith.constant 0 : i32
    %c0_i32_2 = arith.constant 0 : i32
    return %c0_i32, %c0_i32_0, %c0_i32_1 : i32, i32, i32
  }
  func.func @transform_5(%arg0: i32, %arg1: memref<16xi32, #tpu.memory_space<smem>>) -> (i32, i32, i32) {
    %c0_i32 = arith.constant 0 : i32
    %c0_i32_0 = arith.constant 0 : i32
    %c0_i32_1 = arith.constant 0 : i32
    return %c0_i32, %arg0, %c0_i32_0 : i32, i32, i32
  }
}

module attributes {stable_mosaic.version = 11 : i64} {
  func.func @_mlp2_kernel(%arg0: i32, %arg1: memref<16x32xf32, #tpu.memory_space<vmem>>, %arg2: memref<16x32xf32, #tpu.memory_space<vmem>>, %arg3: memref<2x2x32x32xf32, #tpu.memory_space<vmem>>, %arg4: memref<2x1x32xf32, #tpu.memory_space<vmem>>, %arg5: memref<2x1x32x32xf32, #tpu.memory_space<vmem>>, %arg6: memref<1x1x32xf32, #tpu.memory_space<vmem>>, %arg7: memref<16x32xf32, #tpu.memory_space<vmem>>) attributes {dimension_semantics = [#tpu.dimension_semantics<parallel>], iteration_bounds = array<i64: 1>, scalar_prefetch = 0 : i64, scratch_operands = 0 : i64, tpu.core_type = #tpu.core_type<tc>, window_params = [{transform_indices = @transform_0, window_bounds = array<i64: 16, 32>}, {transform_indices = @transform_1, window_bounds = array<i64: 16, 32>}, {pipeline_mode = #tpu.pipeline_mode<synchronous>, transform_indices = @transform_2, window_bounds = array<i64: 2, 2, 32, 32>}, {pipeline_mode = #tpu.pipeline_mode<synchronous>, transform_indices = @transform_3, window_bounds = array<i64: 2, 1, 32>}, {pipeline_mode = #tpu.pipeline_mode<synchronous>, transform_indices = @transform_4, window_bounds = array<i64: 2, 1, 32, 32>}, {pipeline_mode = #tpu.pipeline_mode<synchronous>, transform_indices = @transform_5, window_bounds = array<i64: 1, 1, 32>}, {transform_indices = @transform_6, window_bounds = array<i64: 16, 32>}]} {
    %c0 = arith.constant 0 : index
    %c0_0 = arith.constant 0 : index
    %0 = vector.load %arg1[%c0, %c0_0] : memref<16x32xf32, #tpu.memory_space<vmem>>, vector<16x32xf32>
    %c0_1 = arith.constant 0 : index
    %c0_2 = arith.constant 0 : index
    %1 = vector.load %arg2[%c0_1, %c0_2] : memref<16x32xf32, #tpu.memory_space<vmem>>, vector<16x32xf32>
    %c0_3 = arith.constant 0 : index
    %c0_4 = arith.constant 0 : index
    %c0_5 = arith.constant 0 : index
    %c0_6 = arith.constant 0 : index
    %2 = vector.load %arg3[%c0_3, %c0_4, %c0_5, %c0_6] : memref<2x2x32x32xf32, #tpu.memory_space<vmem>>, vector<1x1x32x32xf32>
    %3 = vector.shape_cast %2 : vector<1x1x32x32xf32> to vector<32x32xf32>
    %cst = arith.constant dense<0.000000e+00> : vector<16x32xf32>
    %4 = tpu.matmul %0, %3, %cst {dimension_numbers = #tpu.dot_dimension_numbers<[1], [0], [0], [1], [0, 0, 1, 1], [], []>} : vector<16x32xf32>, vector<32x32xf32>, vector<16x32xf32> -> vector<16x32xf32>
    %c1 = arith.constant 1 : index
    %c0_7 = arith.constant 0 : index
    %c0_8 = arith.constant 0 : index
    %c0_9 = arith.constant 0 : index
    %5 = vector.load %arg3[%c1, %c0_7, %c0_8, %c0_9] : memref<2x2x32x32xf32, #tpu.memory_space<vmem>>, vector<1x1x32x32xf32>
    %6 = vector.shape_cast %5 : vector<1x1x32x32xf32> to vector<32x32xf32>
    %cst_10 = arith.constant dense<0.000000e+00> : vector<16x32xf32>
    %7 = tpu.matmul %1, %6, %cst_10 {dimension_numbers = #tpu.dot_dimension_numbers<[1], [0], [0], [1], [0, 0, 1, 1], [], []>} : vector<16x32xf32>, vector<32x32xf32>, vector<16x32xf32> -> vector<16x32xf32>
    %8 = arith.addf %4, %7 : vector<16x32xf32>
    %c0_11 = arith.constant 0 : index
    %c0_12 = arith.constant 0 : index
    %c0_13 = arith.constant 0 : index
    %9 = vector.load %arg4[%c0_11, %c0_12, %c0_13] : memref<2x1x32xf32, #tpu.memory_space<vmem>>, vector<1x1x32xf32>
    %10 = vector.shape_cast %9 : vector<1x1x32xf32> to vector<1x32xf32>
    %11 = vector.broadcast %10 : vector<1x32xf32> to vector<16x32xf32>
    %12 = arith.addf %8, %11 : vector<16x32xf32>
    %c0_14 = arith.constant 0 : index
    %c1_15 = arith.constant 1 : index
    %c0_16 = arith.constant 0 : index
    %c0_17 = arith.constant 0 : index
    %13 = vector.load %arg3[%c0_14, %c1_15, %c0_16, %c0_17] : memref<2x2x32x32xf32, #tpu.memory_space<vmem>>, vector<1x1x32x32xf32>
    %14 = vector.shape_cast %13 : vector<1x1x32x32xf32> to vector<32x32xf32>
    %cst_18 = arith.constant dense<0.000000e+00> : vector<16x32xf32>
    %15 = tpu.matmul %0, %14, %cst_18 {dimension_numbers = #tpu.dot_dimension_numbers<[1], [0], [0], [1], [0, 0, 1, 1], [], []>} : vector<16x32xf32>, vector<32x32xf32>, vector<16x32xf32> -> vector<16x32xf32>
    %c1_19 = arith.constant 1 : index
    %c1_20 = arith.constant 1 : index
    %c0_21 = arith.constant 0 : index
    %c0_22 = arith.constant 0 : index
    %16 = vector.load %arg3[%c1_19, %c1_20, %c0_21, %c0_22] : memref<2x2x32x32xf32, #tpu.memory_space<vmem>>, vector<1x1x32x32xf32>
    %17 = vector.shape_cast %16 : vector<1x1x32x32xf32> to vector<32x32xf32>
    %cst_23 = arith.constant dense<0.000000e+00> : vector<16x32xf32>
    %18 = tpu.matmul %1, %17, %cst_23 {dimension_numbers = #tpu.dot_dimension_numbers<[1], [0], [0], [1], [0, 0, 1, 1], [], []>} : vector<16x32xf32>, vector<32x32xf32>, vector<16x32xf32> -> vector<16x32xf32>
    %19 = arith.addf %15, %18 : vector<16x32xf32>
    %c1_24 = arith.constant 1 : index
    %c0_25 = arith.constant 0 : index
    %c0_26 = arith.constant 0 : index
    %20 = vector.load %arg4[%c1_24, %c0_25, %c0_26] : memref<2x1x32xf32, #tpu.memory_space<vmem>>, vector<1x1x32xf32>
    %21 = vector.shape_cast %20 : vector<1x1x32xf32> to vector<1x32xf32>
    %22 = vector.broadcast %21 : vector<1x32xf32> to vector<16x32xf32>
    %23 = arith.addf %19, %22 : vector<16x32xf32>
    %cst_27 = arith.constant 2.000000e+01 : f32
    %24 = vector.broadcast %cst_27 : f32 to vector<16x32xf32>
    %25 = arith.minimumf %12, %24 : vector<16x32xf32>
    %26 = math.exp %25 : vector<16x32xf32>
    %cst_28 = arith.constant 2.000000e+00 : f32
    %27 = vector.broadcast %cst_28 : f32 to vector<16x32xf32>
    %28 = arith.addf %26, %27 : vector<16x32xf32>
    %29 = arith.mulf %26, %28 : vector<16x32xf32>
    %30 = arith.mulf %12, %29 : vector<16x32xf32>
    %cst_29 = arith.constant 2.000000e+00 : f32
    %31 = vector.broadcast %cst_29 : f32 to vector<16x32xf32>
    %32 = arith.addf %29, %31 : vector<16x32xf32>
    %33 = arith.divf %30, %32 : vector<16x32xf32>
    %34 = arith.addf %0, %33 : vector<16x32xf32>
    %cst_30 = arith.constant 2.000000e+01 : f32
    %35 = vector.broadcast %cst_30 : f32 to vector<16x32xf32>
    %36 = arith.minimumf %23, %35 : vector<16x32xf32>
    %37 = math.exp %36 : vector<16x32xf32>
    %cst_31 = arith.constant 2.000000e+00 : f32
    %38 = vector.broadcast %cst_31 : f32 to vector<16x32xf32>
    %39 = arith.addf %37, %38 : vector<16x32xf32>
    %40 = arith.mulf %37, %39 : vector<16x32xf32>
    %41 = arith.mulf %23, %40 : vector<16x32xf32>
    %cst_32 = arith.constant 2.000000e+00 : f32
    %42 = vector.broadcast %cst_32 : f32 to vector<16x32xf32>
    %43 = arith.addf %40, %42 : vector<16x32xf32>
    %44 = arith.divf %41, %43 : vector<16x32xf32>
    %45 = arith.addf %1, %44 : vector<16x32xf32>
    %c0_33 = arith.constant 0 : index
    %c0_34 = arith.constant 0 : index
    %c0_35 = arith.constant 0 : index
    %c0_36 = arith.constant 0 : index
    %46 = vector.load %arg5[%c0_33, %c0_34, %c0_35, %c0_36] : memref<2x1x32x32xf32, #tpu.memory_space<vmem>>, vector<1x1x32x32xf32>
    %47 = vector.shape_cast %46 : vector<1x1x32x32xf32> to vector<32x32xf32>
    %cst_37 = arith.constant dense<0.000000e+00> : vector<16x32xf32>
    %48 = tpu.matmul %34, %47, %cst_37 {dimension_numbers = #tpu.dot_dimension_numbers<[1], [0], [0], [1], [0, 0, 1, 1], [], []>} : vector<16x32xf32>, vector<32x32xf32>, vector<16x32xf32> -> vector<16x32xf32>
    %c1_38 = arith.constant 1 : index
    %c0_39 = arith.constant 0 : index
    %c0_40 = arith.constant 0 : index
    %c0_41 = arith.constant 0 : index
    %49 = vector.load %arg5[%c1_38, %c0_39, %c0_40, %c0_41] : memref<2x1x32x32xf32, #tpu.memory_space<vmem>>, vector<1x1x32x32xf32>
    %50 = vector.shape_cast %49 : vector<1x1x32x32xf32> to vector<32x32xf32>
    %cst_42 = arith.constant dense<0.000000e+00> : vector<16x32xf32>
    %51 = tpu.matmul %45, %50, %cst_42 {dimension_numbers = #tpu.dot_dimension_numbers<[1], [0], [0], [1], [0, 0, 1, 1], [], []>} : vector<16x32xf32>, vector<32x32xf32>, vector<16x32xf32> -> vector<16x32xf32>
    %52 = arith.addf %48, %51 : vector<16x32xf32>
    %c0_43 = arith.constant 0 : index
    %c0_44 = arith.constant 0 : index
    %c0_45 = arith.constant 0 : index
    %53 = vector.load %arg6[%c0_43, %c0_44, %c0_45] : memref<1x1x32xf32, #tpu.memory_space<vmem>>, vector<1x1x32xf32>
    %54 = vector.shape_cast %53 : vector<1x1x32xf32> to vector<1x32xf32>
    %55 = vector.broadcast %54 : vector<1x32xf32> to vector<16x32xf32>
    %56 = arith.addf %52, %55 : vector<16x32xf32>
    %c0_46 = arith.constant 0 : index
    %c0_47 = arith.constant 0 : index
    %57 = vector.load %arg7[%c0_46, %c0_47] : memref<16x32xf32, #tpu.memory_space<vmem>>, vector<16x32xf32>
    tpu.vector_store %arg7[%c0_46, %c0_47], %56 {strides = array<i32>} : memref<16x32xf32, #tpu.memory_space<vmem>>, vector<16x32xf32>,
    return
  }
  func.func @transform_0(%arg0: i32) -> (i32, i32) {
    %c0_i32 = arith.constant 0 : i32
    %c0_i32_0 = arith.constant 0 : i32
    return %arg0, %c0_i32 : i32, i32
  }
  func.func @transform_1(%arg0: i32) -> (i32, i32) {
    %c0_i32 = arith.constant 0 : i32
    %c0_i32_0 = arith.constant 0 : i32
    return %arg0, %c0_i32 : i32, i32
  }
  func.func @transform_2(%arg0: i32) -> (i32, i32, i32, i32) {
    %c0_i32 = arith.constant 0 : i32
    %c0_i32_0 = arith.constant 0 : i32
    %c0_i32_1 = arith.constant 0 : i32
    %c0_i32_2 = arith.constant 0 : i32
    %c0_i32_3 = arith.constant 0 : i32
    return %c0_i32, %c0_i32_0, %c0_i32_1, %c0_i32_2 : i32, i32, i32, i32
  }
  func.func @transform_3(%arg0: i32) -> (i32, i32, i32) {
    %c0_i32 = arith.constant 0 : i32
    %c0_i32_0 = arith.constant 0 : i32
    %c0_i32_1 = arith.constant 0 : i32
    %c0_i32_2 = arith.constant 0 : i32
    return %c0_i32, %c0_i32_0, %c0_i32_1 : i32, i32, i32
  }
  func.func @transform_4(%arg0: i32) -> (i32, i32, i32, i32) {
    %c0_i32 = arith.constant 0 : i32
    %c0_i32_0 = arith.constant 0 : i32
    %c0_i32_1 = arith.constant 0 : i32
    %c0_i32_2 = arith.constant 0 : i32
    %c0_i32_3 = arith.constant 0 : i32
    return %c0_i32, %c0_i32_0, %c0_i32_1, %c0_i32_2 : i32, i32, i32, i32
  }
  func.func @transform_5(%arg0: i32) -> (i32, i32, i32) {
    %c0_i32 = arith.constant 0 : i32
    %c0_i32_0 = arith.constant 0 : i32
    %c0_i32_1 = arith.constant 0 : i32
    %c0_i32_2 = arith.constant 0 : i32
    return %c0_i32, %c0_i32_0, %c0_i32_1 : i32, i32, i32
  }
  func.func @transform_6(%arg0: i32) -> (i32, i32) {
    %c0_i32 = arith.constant 0 : i32
    %c0_i32_0 = arith.constant 0 : i32
    return %arg0, %c0_i32 : i32, i32
  }
}

module attributes {stable_mosaic.version = 11 : i64} {
  func.func @_mlp_kernel(%arg0: i32, %arg1: memref<8x32xf32, #tpu.memory_space<vmem>>, %arg2: memref<32x32xf32, #tpu.memory_space<vmem>>, %arg3: memref<1x32xf32, #tpu.memory_space<vmem>>, %arg4: memref<32x32xf32, #tpu.memory_space<vmem>>, %arg5: memref<1x32xf32, #tpu.memory_space<vmem>>, %arg6: memref<8x32xf32, #tpu.memory_space<vmem>>) attributes {dimension_semantics = [#tpu.dimension_semantics<parallel>], iteration_bounds = array<i64: 1>, scalar_prefetch = 0 : i64, scratch_operands = 0 : i64, tpu.core_type = #tpu.core_type<tc>, window_params = [{transform_indices = @transform_0, window_bounds = array<i64: 8, 32>}, {pipeline_mode = #tpu.pipeline_mode<synchronous>, transform_indices = @transform_1, window_bounds = array<i64: 32, 32>}, {pipeline_mode = #tpu.pipeline_mode<synchronous>, transform_indices = @transform_2, window_bounds = array<i64: 1, 32>}, {pipeline_mode = #tpu.pipeline_mode<synchronous>, transform_indices = @transform_3, window_bounds = array<i64: 32, 32>}, {pipeline_mode = #tpu.pipeline_mode<synchronous>, transform_indices = @transform_4, window_bounds = array<i64: 1, 32>}, {transform_indices = @transform_5, window_bounds = array<i64: 8, 32>}]} {
    %c0 = arith.constant 0 : index
    %c0_0 = arith.constant 0 : index
    %0 = vector.load %arg1[%c0, %c0_0] : memref<8x32xf32, #tpu.memory_space<vmem>>, vector<8x32xf32>
    %c0_1 = arith.constant 0 : index
    %c0_2 = arith.constant 0 : index
    %1 = vector.load %arg2[%c0_1, %c0_2] : memref<32x32xf32, #tpu.memory_space<vmem>>, vector<32x32xf32>
    %cst = arith.constant dense<0.000000e+00> : vector<8x32xf32>
    %2 = tpu.matmul %0, %1, %cst {dimension_numbers = #tpu.dot_dimension_numbers<[1], [0], [0], [1], [0, 0, 1, 1], [], []>} : vector<8x32xf32>, vector<32x32xf32>, vector<8x32xf32> -> vector<8x32xf32>
    %c0_3 = arith.constant 0 : index
    %c0_4 = arith.constant 0 : index
    %3 = vector.load %arg3[%c0_3, %c0_4] : memref<1x32xf32, #tpu.memory_space<vmem>>, vector<1x32xf32>
    %4 = vector.broadcast %3 : vector<1x32xf32> to vector<8x32xf32>
    %5 = arith.addf %2, %4 : vector<8x32xf32>
    %cst_5 = arith.constant 2.000000e+01 : f32
    %6 = vector.broadcast %cst_5 : f32 to vector<8x32xf32>
    %7 = arith.minimumf %5, %6 : vector<8x32xf32>
    %8 = math.exp %7 : vector<8x32xf32>
    %cst_6 = arith.constant 2.000000e+00 : f32
    %9 = vector.broadcast %cst_6 : f32 to vector<8x32xf32>
    %10 = arith.addf %8, %9 : vector<8x32xf32>
    %11 = arith.mulf %8, %10 : vector<8x32xf32>
    %12 = arith.mulf %5, %11 : vector<8x32xf32>
    %cst_7 = arith.constant 2.000000e+00 : f32
    %13 = vector.broadcast %cst_7 : f32 to vector<8x32xf32>
    %14 = arith.addf %11, %13 : vector<8x32xf32>
    %15 = arith.divf %12, %14 : vector<8x32xf32>
    %16 = arith.addf %0, %15 : vector<8x32xf32>
    %c0_8 = arith.constant 0 : index
    %c0_9 = arith.constant 0 : index
    %17 = vector.load %arg4[%c0_8, %c0_9] : memref<32x32xf32, #tpu.memory_space<vmem>>, vector<32x32xf32>
    %cst_10 = arith.constant dense<0.000000e+00> : vector<8x32xf32>
    %18 = tpu.matmul %16, %17, %cst_10 {dimension_numbers = #tpu.dot_dimension_numbers<[1], [0], [0], [1], [0, 0, 1, 1], [], []>} : vector<8x32xf32>, vector<32x32xf32>, vector<8x32xf32> -> vector<8x32xf32>
    %c0_11 = arith.constant 0 : index
    %c0_12 = arith.constant 0 : index
    %19 = vector.load %arg5[%c0_11, %c0_12] : memref<1x32xf32, #tpu.memory_space<vmem>>, vector<1x32xf32>
    %20 = vector.broadcast %19 : vector<1x32xf32> to vector<8x32xf32>
    %21 = arith.addf %18, %20 : vector<8x32xf32>
    %c0_13 = arith.constant 0 : index
    %c0_14 = arith.constant 0 : index
    %22 = vector.load %arg6[%c0_13, %c0_14] : memref<8x32xf32, #tpu.memory_space<vmem>>, vector<8x32xf32>
    tpu.vector_store %arg6[%c0_13, %c0_14], %21 {strides = array<i32>} : memref<8x32xf32, #tpu.memory_space<vmem>>, vector<8x32xf32>,
    return
  }
  func.func @transform_0(%arg0: i32) -> (i32, i32) {
    %c0_i32 = arith.constant 0 : i32
    %c0_i32_0 = arith.constant 0 : i32
    return %arg0, %c0_i32 : i32, i32
  }
  func.func @transform_1(%arg0: i32) -> (i32, i32) {
    %c0_i32 = arith.constant 0 : i32
    %c0_i32_0 = arith.constant 0 : i32
    %c0_i32_1 = arith.constant 0 : i32
    return %c0_i32, %c0_i32_0 : i32, i32
  }
  func.func @transform_2(%arg0: i32) -> (i32, i32) {
    %c0_i32 = arith.constant 0 : i32
    %c0_i32_0 = arith.constant 0 : i32
    %c0_i32_1 = arith.constant 0 : i32
    return %c0_i32, %c0_i32_0 : i32, i32
  }
  func.func @transform_3(%arg0: i32) -> (i32, i32) {
    %c0_i32 = arith.constant 0 : i32
    %c0_i32_0 = arith.constant 0 : i32
    %c0_i32_1 = arith.constant 0 : i32
    return %c0_i32, %c0_i32_0 : i32, i32
  }
  func.func @transform_4(%arg0: i32) -> (i32, i32) {
    %c0_i32 = arith.constant 0 : i32
    %c0_i32_0 = arith.constant 0 : i32
    %c0_i32_1 = arith.constant 0 : i32
    return %c0_i32, %c0_i32_0 : i32, i32
  }
  func.func @transform_5(%arg0: i32) -> (i32, i32) {
    %c0_i32 = arith.constant 0 : i32
    %c0_i32_0 = arith.constant 0 : i32
    return %arg0, %c0_i32 : i32, i32
  }
}

module attributes {stable_mosaic.version = 11 : i64} {
  func.func @kernel(%arg0: i32, %arg1: memref<16xi32, #tpu.memory_space<smem>>, %arg2: memref<16x32xf32, #tpu.memory_space<vmem>>, %arg3: memref<2x2x32x32xf32, #tpu.memory_space<vmem>>, %arg4: memref<2x1x32xf32, #tpu.memory_space<vmem>>, %arg5: memref<2x2x32x32xf32, #tpu.memory_space<vmem>>, %arg6: memref<2x1x32xf32, #tpu.memory_space<vmem>>, %arg7: memref<2x8x32xf32, #tpu.memory_space<vmem>>, %arg8: memref<8x32xf32, #tpu.memory_space<vmem>>, %arg9: memref<8x32xf32, #tpu.memory_space<vmem>>) attributes {dimension_semantics = [#tpu.dimension_semantics<parallel>], iteration_bounds = array<i64: 1>, scalar_prefetch = 1 : i64, scratch_operands = 2 : i64, tpu.core_type = #tpu.core_type<tc>, window_params = [{pipeline_mode = #tpu.pipeline_mode<synchronous>, transform_indices = @transform_0, window_bounds = array<i64: 16, 32>}, {pipeline_mode = #tpu.pipeline_mode<synchronous>, transform_indices = @transform_1, window_bounds = array<i64: 2, 2, 32, 32>}, {pipeline_mode = #tpu.pipeline_mode<synchronous>, transform_indices = @transform_2, window_bounds = array<i64: 2, 1, 32>}, {pipeline_mode = #tpu.pipeline_mode<synchronous>, transform_indices = @transform_3, window_bounds = array<i64: 2, 2, 32, 32>}, {pipeline_mode = #tpu.pipeline_mode<synchronous>, transform_indices = @transform_4, window_bounds = array<i64: 2, 1, 32>}, {transform_indices = @transform_5, window_bounds = array<i64: 2, 8, 32>}]} {
    %c16_i32 = arith.constant 16 : i32
    %0 = arith.muli %arg0, %c16_i32 : i32
    %c0_i32 = arith.constant 0 : i32
    %c8_i32 = arith.constant 8 : i32
    %1 = arith.addi %c0_i32, %c8_i32 : i32
    %c1_i32 = arith.constant 1 : i32
    scf.for %arg10 = %c0_i32 to %1 step %c1_i32  : i32 {
      %c2_i32 = arith.constant 2 : i32
      %77 = arith.muli %arg10, %c2_i32 : i32
      %78 = arith.addi %0, %77 : i32
      %c0_i32_70 = arith.constant 0 : i32
      %79 = arith.addi %78, %c0_i32_70 : i32
      %80 = arith.index_cast %79 : i32 to index
      %81 = memref.load %arg1[%80] : memref<16xi32, #tpu.memory_space<smem>>
      %82 = arith.index_cast %81 : i32 to index
      %c0_71 = arith.constant 0 : index
      %83 = vector.load %arg2[%82, %c0_71] : memref<16x32xf32, #tpu.memory_space<vmem>>, vector<1x32xf32>
      %84 = arith.index_cast %arg10 : i32 to index
      %c0_72 = arith.constant 0 : index
      %85 = vector.load %arg8[%84, %c0_72] : memref<8x32xf32, #tpu.memory_space<vmem>>, vector<1x32xf32>
      tpu.vector_store %arg8[%84, %c0_72], %83 {strides = array<i32>} : memref<8x32xf32, #tpu.memory_space<vmem>>, vector<1x32xf32>,
    }
    %c8_i32_0 = arith.constant 8 : i32
    %c0_i32_1 = arith.constant 0 : i32
    %c8_i32_2 = arith.constant 8 : i32
    %2 = arith.addi %c0_i32_1, %c8_i32_2 : i32
    %c1_i32_3 = arith.constant 1 : i32
    scf.for %arg10 = %c0_i32_1 to %2 step %c1_i32_3  : i32 {
      %c2_i32 = arith.constant 2 : i32
      %77 = arith.muli %arg10, %c2_i32 : i32
      %78 = arith.addi %0, %77 : i32
      %c1_i32_70 = arith.constant 1 : i32
      %79 = arith.addi %78, %c1_i32_70 : i32
      %80 = arith.index_cast %79 : i32 to index
      %81 = memref.load %arg1[%80] : memref<16xi32, #tpu.memory_space<smem>>
      %82 = arith.index_cast %81 : i32 to index
      %c0_71 = arith.constant 0 : index
      %83 = vector.load %arg2[%82, %c0_71] : memref<16x32xf32, #tpu.memory_space<vmem>>, vector<1x32xf32>
      %84 = arith.index_cast %arg10 : i32 to index
      %c0_72 = arith.constant 0 : index
      %85 = vector.load %arg9[%84, %c0_72] : memref<8x32xf32, #tpu.memory_space<vmem>>, vector<1x32xf32>
      tpu.vector_store %arg9[%84, %c0_72], %83 {strides = array<i32>} : memref<8x32xf32, #tpu.memory_space<vmem>>, vector<1x32xf32>,
    }
    %c8_i32_4 = arith.constant 8 : i32
    %c0 = arith.constant 0 : index
    %c0_5 = arith.constant 0 : index
    %3 = vector.load %arg8[%c0, %c0_5] : memref<8x32xf32, #tpu.memory_space<vmem>>, vector<8x32xf32>
    %c0_6 = arith.constant 0 : index
    %c0_7 = arith.constant 0 : index
    %4 = vector.load %arg9[%c0_6, %c0_7] : memref<8x32xf32, #tpu.memory_space<vmem>>, vector<8x32xf32>
    %c0_8 = arith.constant 0 : index
    %c0_9 = arith.constant 0 : index
    %c0_10 = arith.constant 0 : index
    %5 = vector.load %arg4[%c0_8, %c0_9, %c0_10] : memref<2x1x32xf32, #tpu.memory_space<vmem>>, vector<1x1x32xf32>
    %6 = vector.shape_cast %5 : vector<1x1x32xf32> to vector<1x32xf32>
    %c0_11 = arith.constant 0 : index
    %c0_12 = arith.constant 0 : index
    %c0_13 = arith.constant 0 : index
    %c0_14 = arith.constant 0 : index
    %7 = vector.load %arg3[%c0_11, %c0_12, %c0_13, %c0_14] : memref<2x2x32x32xf32, #tpu.memory_space<vmem>>, vector<1x1x32x32xf32>
    %8 = vector.shape_cast %7 : vector<1x1x32x32xf32> to vector<32x32xf32>
    %cst = arith.constant dense<0.000000e+00> : vector<8x32xf32>
    %9 = tpu.matmul %3, %8, %cst {dimension_numbers = #tpu.dot_dimension_numbers<[1], [0], [0], [1], [0, 0, 1, 1], [], []>} : vector<8x32xf32>, vector<32x32xf32>, vector<8x32xf32> -> vector<8x32xf32>
    %10 = vector.broadcast %6 : vector<1x32xf32> to vector<8x32xf32>
    %11 = arith.addf %10, %9 : vector<8x32xf32>
    %c1 = arith.constant 1 : index
    %c0_15 = arith.constant 0 : index
    %c0_16 = arith.constant 0 : index
    %c0_17 = arith.constant 0 : index
    %12 = vector.load %arg3[%c1, %c0_15, %c0_16, %c0_17] : memref<2x2x32x32xf32, #tpu.memory_space<vmem>>, vector<1x1x32x32xf32>
    %13 = vector.shape_cast %12 : vector<1x1x32x32xf32> to vector<32x32xf32>
    %cst_18 = arith.constant dense<0.000000e+00> : vector<8x32xf32>
    %14 = tpu.matmul %4, %13, %cst_18 {dimension_numbers = #tpu.dot_dimension_numbers<[1], [0], [0], [1], [0, 0, 1, 1], [], []>} : vector<8x32xf32>, vector<32x32xf32>, vector<8x32xf32> -> vector<8x32xf32>
    %15 = arith.addf %11, %14 : vector<8x32xf32>
    %cst_19 = arith.constant 2.000000e+01 : f32
    %16 = vector.broadcast %cst_19 : f32 to vector<8x32xf32>
    %17 = arith.minimumf %15, %16 : vector<8x32xf32>
    %18 = math.exp %17 : vector<8x32xf32>
    %cst_20 = arith.constant 2.000000e+00 : f32
    %19 = vector.broadcast %cst_20 : f32 to vector<8x32xf32>
    %20 = arith.addf %18, %19 : vector<8x32xf32>
    %21 = arith.mulf %18, %20 : vector<8x32xf32>
    %22 = arith.mulf %15, %21 : vector<8x32xf32>
    %cst_21 = arith.constant 2.000000e+00 : f32
    %23 = vector.broadcast %cst_21 : f32 to vector<8x32xf32>
    %24 = arith.addf %21, %23 : vector<8x32xf32>
    %25 = arith.divf %22, %24 : vector<8x32xf32>
    %26 = arith.addf %3, %25 : vector<8x32xf32>
    %c1_22 = arith.constant 1 : index
    %c0_23 = arith.constant 0 : index
    %c0_24 = arith.constant 0 : index
    %27 = vector.load %arg4[%c1_22, %c0_23, %c0_24] : memref<2x1x32xf32, #tpu.memory_space<vmem>>, vector<1x1x32xf32>
    %28 = vector.shape_cast %27 : vector<1x1x32xf32> to vector<1x32xf32>
    %c0_25 = arith.constant 0 : index
    %c1_26 = arith.constant 1 : index
    %c0_27 = arith.constant 0 : index
    %c0_28 = arith.constant 0 : index
    %29 = vector.load %arg3[%c0_25, %c1_26, %c0_27, %c0_28] : memref<2x2x32x32xf32, #tpu.memory_space<vmem>>, vector<1x1x32x32xf32>
    %30 = vector.shape_cast %29 : vector<1x1x32x32xf32> to vector<32x32xf32>
    %cst_29 = arith.constant dense<0.000000e+00> : vector<8x32xf32>
    %31 = tpu.matmul %3, %30, %cst_29 {dimension_numbers = #tpu.dot_dimension_numbers<[1], [0], [0], [1], [0, 0, 1, 1], [], []>} : vector<8x32xf32>, vector<32x32xf32>, vector<8x32xf32> -> vector<8x32xf32>
    %32 = vector.broadcast %28 : vector<1x32xf32> to vector<8x32xf32>
    %33 = arith.addf %32, %31 : vector<8x32xf32>
    %c1_30 = arith.constant 1 : index
    %c1_31 = arith.constant 1 : index
    %c0_32 = arith.constant 0 : index
    %c0_33 = arith.constant 0 : index
    %34 = vector.load %arg3[%c1_30, %c1_31, %c0_32, %c0_33] : memref<2x2x32x32xf32, #tpu.memory_space<vmem>>, vector<1x1x32x32xf32>
    %35 = vector.shape_cast %34 : vector<1x1x32x32xf32> to vector<32x32xf32>
    %cst_34 = arith.constant dense<0.000000e+00> : vector<8x32xf32>
    %36 = tpu.matmul %4, %35, %cst_34 {dimension_numbers = #tpu.dot_dimension_numbers<[1], [0], [0], [1], [0, 0, 1, 1], [], []>} : vector<8x32xf32>, vector<32x32xf32>, vector<8x32xf32> -> vector<8x32xf32>
    %37 = arith.addf %33, %36 : vector<8x32xf32>
    %cst_35 = arith.constant 2.000000e+01 : f32
    %38 = vector.broadcast %cst_35 : f32 to vector<8x32xf32>
    %39 = arith.minimumf %37, %38 : vector<8x32xf32>
    %40 = math.exp %39 : vector<8x32xf32>
    %cst_36 = arith.constant 2.000000e+00 : f32
    %41 = vector.broadcast %cst_36 : f32 to vector<8x32xf32>
    %42 = arith.addf %40, %41 : vector<8x32xf32>
    %43 = arith.mulf %40, %42 : vector<8x32xf32>
    %44 = arith.mulf %37, %43 : vector<8x32xf32>
    %cst_37 = arith.constant 2.000000e+00 : f32
    %45 = vector.broadcast %cst_37 : f32 to vector<8x32xf32>
    %46 = arith.addf %43, %45 : vector<8x32xf32>
    %47 = arith.divf %44, %46 : vector<8x32xf32>
    %48 = arith.addf %4, %47 : vector<8x32xf32>
    %c0_38 = arith.constant 0 : index
    %c0_39 = arith.constant 0 : index
    %c0_40 = arith.constant 0 : index
    %49 = vector.load %arg6[%c0_38, %c0_39, %c0_40] : memref<2x1x32xf32, #tpu.memory_space<vmem>>, vector<1x1x32xf32>
    %50 = vector.shape_cast %49 : vector<1x1x32xf32> to vector<1x32xf32>
    %c0_41 = arith.constant 0 : index
    %c0_42 = arith.constant 0 : index
    %c0_43 = arith.constant 0 : index
    %c0_44 = arith.constant 0 : index
    %51 = vector.load %arg5[%c0_41, %c0_42, %c0_43, %c0_44] : memref<2x2x32x32xf32, #tpu.memory_space<vmem>>, vector<1x1x32x32xf32>
    %52 = vector.shape_cast %51 : vector<1x1x32x32xf32> to vector<32x32xf32>
    %cst_45 = arith.constant dense<0.000000e+00> : vector<8x32xf32>
    %53 = tpu.matmul %26, %52, %cst_45 {dimension_numbers = #tpu.dot_dimension_numbers<[1], [0], [0], [1], [0, 0, 1, 1], [], []>} : vector<8x32xf32>, vector<32x32xf32>, vector<8x32xf32> -> vector<8x32xf32>
    %54 = vector.broadcast %50 : vector<1x32xf32> to vector<8x32xf32>
    %55 = arith.addf %54, %53 : vector<8x32xf32>
    %c1_46 = arith.constant 1 : index
    %c0_47 = arith.constant 0 : index
    %c0_48 = arith.constant 0 : index
    %c0_49 = arith.constant 0 : index
    %56 = vector.load %arg5[%c1_46, %c0_47, %c0_48, %c0_49] : memref<2x2x32x32xf32, #tpu.memory_space<vmem>>, vector<1x1x32x32xf32>
    %57 = vector.shape_cast %56 : vector<1x1x32x32xf32> to vector<32x32xf32>
    %cst_50 = arith.constant dense<0.000000e+00> : vector<8x32xf32>
    %58 = tpu.matmul %48, %57, %cst_50 {dimension_numbers = #tpu.dot_dimension_numbers<[1], [0], [0], [1], [0, 0, 1, 1], [], []>} : vector<8x32xf32>, vector<32x32xf32>, vector<8x32xf32> -> vector<8x32xf32>
    %59 = arith.addf %55, %58 : vector<8x32xf32>
    %c0_51 = arith.constant 0 : index
    %c0_52 = arith.constant 0 : index
    %c0_53 = arith.constant 0 : index
    %60 = vector.load %arg7[%c0_51, %c0_52, %c0_53] : memref<2x8x32xf32, #tpu.memory_space<vmem>>, vector<1x8x32xf32>
    %61 = vector.shape_cast %60 : vector<1x8x32xf32> to vector<8x32xf32>
    %62 = vector.shape_cast %59 : vector<8x32xf32> to vector<1x8x32xf32>
    tpu.vector_store %arg7[%c0_51, %c0_52, %c0_53], %62 {strides = array<i32>} : memref<2x8x32xf32, #tpu.memory_space<vmem>>, vector<1x8x32xf32>,
    %c1_54 = arith.constant 1 : index
    %c0_55 = arith.constant 0 : index
    %c0_56 = arith.constant 0 : index
    %63 = vector.load %arg6[%c1_54, %c0_55, %c0_56] : memref<2x1x32xf32, #tpu.memory_space<vmem>>, vector<1x1x32xf32>
    %64 = vector.shape_cast %63 : vector<1x1x32xf32> to vector<1x32xf32>
    %c0_57 = arith.constant 0 : index
    %c1_58 = arith.constant 1 : index
    %c0_59 = arith.constant 0 : index
    %c0_60 = arith.constant 0 : index
    %65 = vector.load %arg5[%c0_57, %c1_58, %c0_59, %c0_60] : memref<2x2x32x32xf32, #tpu.memory_space<vmem>>, vector<1x1x32x32xf32>
    %66 = vector.shape_cast %65 : vector<1x1x32x32xf32> to vector<32x32xf32>
    %cst_61 = arith.constant dense<0.000000e+00> : vector<8x32xf32>
    %67 = tpu.matmul %26, %66, %cst_61 {dimension_numbers = #tpu.dot_dimension_numbers<[1], [0], [0], [1], [0, 0, 1, 1], [], []>} : vector<8x32xf32>, vector<32x32xf32>, vector<8x32xf32> -> vector<8x32xf32>
    %68 = vector.broadcast %64 : vector<1x32xf32> to vector<8x32xf32>
    %69 = arith.addf %68, %67 : vector<8x32xf32>
    %c1_62 = arith.constant 1 : index
    %c1_63 = arith.constant 1 : index
    %c0_64 = arith.constant 0 : index
    %c0_65 = arith.constant 0 : index
    %70 = vector.load %arg5[%c1_62, %c1_63, %c0_64, %c0_65] : memref<2x2x32x32xf32, #tpu.memory_space<vmem>>, vector<1x1x32x32xf32>
    %71 = vector.shape_cast %70 : vector<1x1x32x32xf32> to vector<32x32xf32>
    %cst_66 = arith.constant dense<0.000000e+00> : vector<8x32xf32>
    %72 = tpu.matmul %48, %71, %cst_66 {dimension_numbers = #tpu.dot_dimension_numbers<[1], [0], [0], [1], [0, 0, 1, 1], [], []>} : vector<8x32xf32>, vector<32x32xf32>, vector<8x32xf32> -> vector<8x32xf32>
    %73 = arith.addf %69, %72 : vector<8x32xf32>
    %c1_67 = arith.constant 1 : index
    %c0_68 = arith.constant 0 : index
    %c0_69 = arith.constant 0 : index
    %74 = vector.load %arg7[%c1_67, %c0_68, %c0_69] : memref<2x8x32xf32, #tpu.memory_space<vmem>>, vector<1x8x32xf32>
    %75 = vector.shape_cast %74 : vector<1x8x32xf32> to vector<8x32xf32>
    %76 = vector.shape_cast %73 : vector<8x32xf32> to vector<1x8x32xf32>
    tpu.vector_store %arg7[%c1_67, %c0_68, %c0_69], %76 {strides = array<i32>} : memref<2x8x32xf32, #tpu.memory_space<vmem>>, vector<1x8x32xf32>,
    return
  }
  func.func @transform_0(%arg0: i32, %arg1: memref<16xi32, #tpu.memory_space<smem>>) -> (i32, i32) {
    %c0_i32 = arith.constant 0 : i32
    %c0_i32_0 = arith.constant 0 : i32
    %c0_i32_1 = arith.constant 0 : i32
    return %c0_i32, %c0_i32_0 : i32, i32
  }
  func.func @transform_1(%arg0: i32, %arg1: memref<16xi32, #tpu.memory_space<smem>>) -> (i32, i32, i32, i32) {
    %c0_i32 = arith.constant 0 : i32
    %c0_i32_0 = arith.constant 0 : i32
    %c0_i32_1 = arith.constant 0 : i32
    %c0_i32_2 = arith.constant 0 : i32
    %c0_i32_3 = arith.constant 0 : i32
    return %c0_i32, %c0_i32_0, %c0_i32_1, %c0_i32_2 : i32, i32, i32, i32
  }
  func.func @transform_2(%arg0: i32, %arg1: memref<16xi32, #tpu.memory_space<smem>>) -> (i32, i32, i32) {
    %c0_i32 = arith.constant 0 : i32
    %c0_i32_0 = arith.constant 0 : i32
    %c0_i32_1 = arith.constant 0 : i32
    %c0_i32_2 = arith.constant 0 : i32
    return %c0_i32, %c0_i32_0, %c0_i32_1 : i32, i32, i32
  }
  func.func @transform_3(%arg0: i32, %arg1: memref<16xi32, #tpu.memory_space<smem>>) -> (i32, i32, i32, i32) {
    %c0_i32 = arith.constant 0 : i32
    %c0_i32_0 = arith.constant 0 : i32
    %c0_i32_1 = arith.constant 0 : i32
    %c0_i32_2 = arith.constant 0 : i32
    %c0_i32_3 = arith.constant 0 : i32
    return %c0_i32, %c0_i32_0, %c0_i32_1, %c0_i32_2 : i32, i32, i32, i32
  }
  func.func @transform_4(%arg0: i32, %arg1: memref<16xi32, #tpu.memory_space<smem>>) -> (i32, i32, i32) {
    %c0_i32 = arith.constant 0 : i32
    %c0_i32_0 = arith.constant 0 : i32
    %c0_i32_1 = arith.constant 0 : i32
    %c0_i32_2 = arith.constant 0 : i32
    return %c0_i32, %c0_i32_0, %c0_i32_1 : i32, i32, i32
  }
  func.func @transform_5(%arg0: i32, %arg1: memref<16xi32, #tpu.memory_space<smem>>) -> (i32, i32, i32) {
    %c0_i32 = arith.constant 0 : i32
    %c0_i32_0 = arith.constant 0 : i32
    %c0_i32_1 = arith.constant 0 : i32
    return %c0_i32, %arg0, %c0_i32_0 : i32, i32, i32
  }
}

module attributes {stable_mosaic.version = 11 : i64} {
  func.func @_mlp2_kernel(%arg0: i32, %arg1: memref<16x32xf32, #tpu.memory_space<vmem>>, %arg2: memref<16x32xf32, #tpu.memory_space<vmem>>, %arg3: memref<2x2x32x32xf32, #tpu.memory_space<vmem>>, %arg4: memref<2x1x32xf32, #tpu.memory_space<vmem>>, %arg5: memref<2x1x32x32xf32, #tpu.memory_space<vmem>>, %arg6: memref<1x1x32xf32, #tpu.memory_space<vmem>>, %arg7: memref<16x32xf32, #tpu.memory_space<vmem>>) attributes {dimension_semantics = [#tpu.dimension_semantics<parallel>], iteration_bounds = array<i64: 1>, scalar_prefetch = 0 : i64, scratch_operands = 0 : i64, tpu.core_type = #tpu.core_type<tc>, window_params = [{transform_indices = @transform_0, window_bounds = array<i64: 16, 32>}, {transform_indices = @transform_1, window_bounds = array<i64: 16, 32>}, {pipeline_mode = #tpu.pipeline_mode<synchronous>, transform_indices = @transform_2, window_bounds = array<i64: 2, 2, 32, 32>}, {pipeline_mode = #tpu.pipeline_mode<synchronous>, transform_indices = @transform_3, window_bounds = array<i64: 2, 1, 32>}, {pipeline_mode = #tpu.pipeline_mode<synchronous>, transform_indices = @transform_4, window_bounds = array<i64: 2, 1, 32, 32>}, {pipeline_mode = #tpu.pipeline_mode<synchronous>, transform_indices = @transform_5, window_bounds = array<i64: 1, 1, 32>}, {transform_indices = @transform_6, window_bounds = array<i64: 16, 32>}]} {
    %c0 = arith.constant 0 : index
    %c0_0 = arith.constant 0 : index
    %0 = vector.load %arg1[%c0, %c0_0] : memref<16x32xf32, #tpu.memory_space<vmem>>, vector<16x32xf32>
    %c0_1 = arith.constant 0 : index
    %c0_2 = arith.constant 0 : index
    %1 = vector.load %arg2[%c0_1, %c0_2] : memref<16x32xf32, #tpu.memory_space<vmem>>, vector<16x32xf32>
    %c0_3 = arith.constant 0 : index
    %c0_4 = arith.constant 0 : index
    %c0_5 = arith.constant 0 : index
    %c0_6 = arith.constant 0 : index
    %2 = vector.load %arg3[%c0_3, %c0_4, %c0_5, %c0_6] : memref<2x2x32x32xf32, #tpu.memory_space<vmem>>, vector<1x1x32x32xf32>
    %3 = vector.shape_cast %2 : vector<1x1x32x32xf32> to vector<32x32xf32>
    %cst = arith.constant dense<0.000000e+00> : vector<16x32xf32>
    %4 = tpu.matmul %0, %3, %cst {dimension_numbers = #tpu.dot_dimension_numbers<[1], [0], [0], [1], [0, 0, 1, 1], [], []>} : vector<16x32xf32>, vector<32x32xf32>, vector<16x32xf32> -> vector<16x32xf32>
    %c1 = arith.constant 1 : index
    %c0_7 = arith.constant 0 : index
    %c0_8 = arith.constant 0 : index
    %c0_9 = arith.constant 0 : index
    %5 = vector.load %arg3[%c1, %c0_7, %c0_8, %c0_9] : memref<2x2x32x32xf32, #tpu.memory_space<vmem>>, vector<1x1x32x32xf32>
    %6 = vector.shape_cast %5 : vector<1x1x32x32xf32> to vector<32x32xf32>
    %cst_10 = arith.constant dense<0.000000e+00> : vector<16x32xf32>
    %7 = tpu.matmul %1, %6, %cst_10 {dimension_numbers = #tpu.dot_dimension_numbers<[1], [0], [0], [1], [0, 0, 1, 1], [], []>} : vector<16x32xf32>, vector<32x32xf32>, vector<16x32xf32> -> vector<16x32xf32>
    %8 = arith.addf %4, %7 : vector<16x32xf32>
    %c0_11 = arith.constant 0 : index
    %c0_12 = arith.constant 0 : index
    %c0_13 = arith.constant 0 : index
    %9 = vector.load %arg4[%c0_11, %c0_12, %c0_13] : memref<2x1x32xf32, #tpu.memory_space<vmem>>, vector<1x1x32xf32>
    %10 = vector.shape_cast %9 : vector<1x1x32xf32> to vector<1x32xf32>
    %11 = vector.broadcast %10 : vector<1x32xf32> to vector<16x32xf32>
    %12 = arith.addf %8, %11 : vector<16x32xf32>
    %c0_14 = arith.constant 0 : index
    %c1_15 = arith.constant 1 : index
    %c0_16 = arith.constant 0 : index
    %c0_17 = arith.constant 0 : index
    %13 = vector.load %arg3[%c0_14, %c1_15, %c0_16, %c0_17] : memref<2x2x32x32xf32, #tpu.memory_space<vmem>>, vector<1x1x32x32xf32>
    %14 = vector.shape_cast %13 : vector<1x1x32x32xf32> to vector<32x32xf32>
    %cst_18 = arith.constant dense<0.000000e+00> : vector<16x32xf32>
    %15 = tpu.matmul %0, %14, %cst_18 {dimension_numbers = #tpu.dot_dimension_numbers<[1], [0], [0], [1], [0, 0, 1, 1], [], []>} : vector<16x32xf32>, vector<32x32xf32>, vector<16x32xf32> -> vector<16x32xf32>
    %c1_19 = arith.constant 1 : index
    %c1_20 = arith.constant 1 : index
    %c0_21 = arith.constant 0 : index
    %c0_22 = arith.constant 0 : index
    %16 = vector.load %arg3[%c1_19, %c1_20, %c0_21, %c0_22] : memref<2x2x32x32xf32, #tpu.memory_space<vmem>>, vector<1x1x32x32xf32>
    %17 = vector.shape_cast %16 : vector<1x1x32x32xf32> to vector<32x32xf32>
    %cst_23 = arith.constant dense<0.000000e+00> : vector<16x32xf32>
    %18 = tpu.matmul %1, %17, %cst_23 {dimension_numbers = #tpu.dot_dimension_numbers<[1], [0], [0], [1], [0, 0, 1, 1], [], []>} : vector<16x32xf32>, vector<32x32xf32>, vector<16x32xf32> -> vector<16x32xf32>
    %19 = arith.addf %15, %18 : vector<16x32xf32>
    %c1_24 = arith.constant 1 : index
    %c0_25 = arith.constant 0 : index
    %c0_26 = arith.constant 0 : index
    %20 = vector.load %arg4[%c1_24, %c0_25, %c0_26] : memref<2x1x32xf32, #tpu.memory_space<vmem>>, vector<1x1x32xf32>
    %21 = vector.shape_cast %20 : vector<1x1x32xf32> to vector<1x32xf32>
    %22 = vector.broadcast %21 : vector<1x32xf32> to vector<16x32xf32>
    %23 = arith.addf %19, %22 : vector<16x32xf32>
    %cst_27 = arith.constant 2.000000e+01 : f32
    %24 = vector.broadcast %cst_27 : f32 to vector<16x32xf32>
    %25 = arith.minimumf %12, %24 : vector<16x32xf32>
    %26 = math.exp %25 : vector<16x32xf32>
    %cst_28 = arith.constant 2.000000e+00 : f32
    %27 = vector.broadcast %cst_28 : f32 to vector<16x32xf32>
    %28 = arith.addf %26, %27 : vector<16x32xf32>
    %29 = arith.mulf %26, %28 : vector<16x32xf32>
    %30 = arith.mulf %12, %29 : vector<16x32xf32>
    %cst_29 = arith.constant 2.000000e+00 : f32
    %31 = vector.broadcast %cst_29 : f32 to vector<16x32xf32>
    %32 = arith.addf %29, %31 : vector<16x32xf32>
    %33 = arith.divf %30, %32 : vector<16x32xf32>
    %34 = arith.addf %0, %33 : vector<16x32xf32>
    %cst_30 = arith.constant 2.000000e+01 : f32
    %35 = vector.broadcast %cst_30 : f32 to vector<16x32xf32>
    %36 = arith.minimumf %23, %35 : vector<16x32xf32>
    %37 = math.exp %36 : vector<16x32xf32>
    %cst_31 = arith.constant 2.000000e+00 : f32
    %38 = vector.broadcast %cst_31 : f32 to vector<16x32xf32>
    %39 = arith.addf %37, %38 : vector<16x32xf32>
    %40 = arith.mulf %37, %39 : vector<16x32xf32>
    %41 = arith.mulf %23, %40 : vector<16x32xf32>
    %cst_32 = arith.constant 2.000000e+00 : f32
    %42 = vector.broadcast %cst_32 : f32 to vector<16x32xf32>
    %43 = arith.addf %40, %42 : vector<16x32xf32>
    %44 = arith.divf %41, %43 : vector<16x32xf32>
    %45 = arith.addf %1, %44 : vector<16x32xf32>
    %c0_33 = arith.constant 0 : index
    %c0_34 = arith.constant 0 : index
    %c0_35 = arith.constant 0 : index
    %c0_36 = arith.constant 0 : index
    %46 = vector.load %arg5[%c0_33, %c0_34, %c0_35, %c0_36] : memref<2x1x32x32xf32, #tpu.memory_space<vmem>>, vector<1x1x32x32xf32>
    %47 = vector.shape_cast %46 : vector<1x1x32x32xf32> to vector<32x32xf32>
    %cst_37 = arith.constant dense<0.000000e+00> : vector<16x32xf32>
    %48 = tpu.matmul %34, %47, %cst_37 {dimension_numbers = #tpu.dot_dimension_numbers<[1], [0], [0], [1], [0, 0, 1, 1], [], []>} : vector<16x32xf32>, vector<32x32xf32>, vector<16x32xf32> -> vector<16x32xf32>
    %c1_38 = arith.constant 1 : index
    %c0_39 = arith.constant 0 : index
    %c0_40 = arith.constant 0 : index
    %c0_41 = arith.constant 0 : index
    %49 = vector.load %arg5[%c1_38, %c0_39, %c0_40, %c0_41] : memref<2x1x32x32xf32, #tpu.memory_space<vmem>>, vector<1x1x32x32xf32>
    %50 = vector.shape_cast %49 : vector<1x1x32x32xf32> to vector<32x32xf32>
    %cst_42 = arith.constant dense<0.000000e+00> : vector<16x32xf32>
    %51 = tpu.matmul %45, %50, %cst_42 {dimension_numbers = #tpu.dot_dimension_numbers<[1], [0], [0], [1], [0, 0, 1, 1], [], []>} : vector<16x32xf32>, vector<32x32xf32>, vector<16x32xf32> -> vector<16x32xf32>
    %52 = arith.addf %48, %51 : vector<16x32xf32>
    %c0_43 = arith.constant 0 : index
    %c0_44 = arith.constant 0 : index
    %c0_45 = arith.constant 0 : index
    %53 = vector.load %arg6[%c0_43, %c0_44, %c0_45] : memref<1x1x32xf32, #tpu.memory_space<vmem>>, vector<1x1x32xf32>
    %54 = vector.shape_cast %53 : vector<1x1x32xf32> to vector<1x32xf32>
    %55 = vector.broadcast %54 : vector<1x32xf32> to vector<16x32xf32>
    %56 = arith.addf %52, %55 : vector<16x32xf32>
    %c0_46 = arith.constant 0 : index
    %c0_47 = arith.constant 0 : index
    %57 = vector.load %arg7[%c0_46, %c0_47] : memref<16x32xf32, #tpu.memory_space<vmem>>, vector<16x32xf32>
    tpu.vector_store %arg7[%c0_46, %c0_47], %56 {strides = array<i32>} : memref<16x32xf32, #tpu.memory_space<vmem>>, vector<16x32xf32>,
    return
  }
  func.func @transform_0(%arg0: i32) -> (i32, i32) {
    %c0_i32 = arith.constant 0 : i32
    %c0_i32_0 = arith.constant 0 : i32
    return %arg0, %c0_i32 : i32, i32
  }
  func.func @transform_1(%arg0: i32) -> (i32, i32) {
    %c0_i32 = arith.constant 0 : i32
    %c0_i32_0 = arith.constant 0 : i32
    return %arg0, %c0_i32 : i32, i32
  }
  func.func @transform_2(%arg0: i32) -> (i32, i32, i32, i32) {
    %c0_i32 = arith.constant 0 : i32
    %c0_i32_0 = arith.constant 0 : i32
    %c0_i32_1 = arith.constant 0 : i32
    %c0_i32_2 = arith.constant 0 : i32
    %c0_i32_3 = arith.constant 0 : i32
    return %c0_i32, %c0_i32_0, %c0_i32_1, %c0_i32_2 : i32, i32, i32, i32
  }
  func.func @transform_3(%arg0: i32) -> (i32, i32, i32) {
    %c0_i32 = arith.constant 0 : i32
    %c0_i32_0 = arith.constant 0 : i32
    %c0_i32_1 = arith.constant 0 : i32
    %c0_i32_2 = arith.constant 0 : i32
    return %c0_i32, %c0_i32_0, %c0_i32_1 : i32, i32, i32
  }
  func.func @transform_4(%arg0: i32) -> (i32, i32, i32, i32) {
    %c0_i32 = arith.constant 0 : i32
    %c0_i32_0 = arith.constant 0 : i32
    %c0_i32_1 = arith.constant 0 : i32
    %c0_i32_2 = arith.constant 0 : i32
    %c0_i32_3 = arith.constant 0 : i32
    return %c0_i32, %c0_i32_0, %c0_i32_1, %c0_i32_2 : i32, i32, i32, i32
  }
  func.func @transform_5(%arg0: i32) -> (i32, i32, i32) {
    %c0_i32 = arith.constant 0 : i32
    %c0_i32_0 = arith.constant 0 : i32
    %c0_i32_1 = arith.constant 0 : i32
    %c0_i32_2 = arith.constant 0 : i32
    return %c0_i32, %c0_i32_0, %c0_i32_1 : i32, i32, i32
  }
  func.func @transform_6(%arg0: i32) -> (i32, i32) {
    %c0_i32 = arith.constant 0 : i32
    %c0_i32_0 = arith.constant 0 : i32
    return %arg0, %c0_i32 : i32, i32
  }
}

</mosaic_0001>

<bundles_post_ra>
// kernel: fwd.10
= control target key start
LH: loop header
LB: loop body
LE: loop exit
PB: predicated region body
PF: predicated region fallthrough
CT: control target
= control target key end

     0   :  { %s388_s0 = inlined_call_operand.vmem [shape: s32[8], index: 0, kind: input, shape index: {}]   ;;  %s389_s1 = inlined_call_operand.vmem [shape: f32[16,32], index: 1, kind: input, shape index: {}]   ;;  %s390_s2 = inlined_call_operand.vmem [shape: f32[1,1,32,32], index: 2, kind: input, shape index: {}]   ;;  %s391_s3 = inlined_call_operand.vmem [shape: f32[1,1,32], index: 3, kind: input, shape index: {}]   ;;  %s392_s4 = inlined_call_operand.vmem [shape: f32[1,1,32,32], index: 4, kind: input, shape index: {}]   ;;  %s393_s5 = inlined_call_operand.vmem [shape: f32[1,1,32], index: 5, kind: input, shape index: {}]   ;;  %s394_s6 = inlined_call_operand.vmem [shape: f32[1,8,32], index: 6, kind: output, shape index: {}]  }
   0x1   :  { %s11_s23 = sshll.u32 %s388_s0, 4  ;;  %s12_s23 = int_to_ptr.vmem [resolvable:$true] %s11_s23 }
   0x2   :  { %s286_s24 = scalar_lea.vmem %s12_s23, 16  ;;  %p291_p1 = scmp.lt.s32.totalorder %s12_s23, %s12_s23 }
   0x3   :  { %p287_p0 = scmp.ne.s32.totalorder %s12_s23, %s286_s24  ;;  %p292_p2 = scmp.lt.s32.totalorder %s286_s24, %s286_s24 }
   0x5   :  { %p293_p3 = por %p292_p2, %p291_p1 }
   0x7   :  { %p294_p4 = pnand %p293_p3, %p287_p0 }
   0x9   :  { %297 = shalt.err (!%p294_p4)  }
   0xa   :  { %s308_s25 = smov [#allocation4]  }
   0xb   :  { %14 = dma.vmem_to_smem %s12_s23, 16, %s308_s25, [#allocation3] }
   0xc   :  { %302 = dma.done.wait [#allocation3], 16 }
   0xd   :  { %303 = vsyncadd [#allocation3], 4294967280 }
   0xe   :  { %16 = sfence }
   0xf   :  { %s304_s26 = smov 0  }
  0x10 LB: > { %s35_s27 = sld [smem:[#allocation4 + %s306_s26]]  ;;  %vm39_vm0 = vcmask 253952   ;;  %s38_s30 = scalar_lea.vmem [#allocation2], %s306_s26  ;;  %s306_s26 = sphi %s304_s26, %s33_s26  }
  0x11   : > { %s33_s26 = sadd.s32 1, %s306_s26  }
  0x12   : > { %p30_p5 = scmp.ge.s32.totalorder %s33_s26, 8  }
  0x13   :  { %v46_v1 = vld [vmem:[%s390_s2 + $0x18] sm:$0xff] (%p30_p5)  ;;  %v309_v2 = vmov (%p30_p5), 0.0   ;;  %v45_v3 = vld [vmem:[%s390_s2 + $0x10] sm:$0xff] (%p30_p5)  ;;  %vm310_vm1 = vmmov (%p30_p5), 0   ;;  %v44_v4 = vld [vmem:[%s390_s2 + $0x8] sm:$0xff] (%p30_p5)  ;;  %vm47_vm2 = vcmask (%p30_p5), 261120  }
  0x14   :  { %32 = sbr.rel (!%p30_p5) target bundleno = 16 (0x10), region = 49  ;;  %249 = vmatprep.subr.mxu0 (%p30_p5), %v309_v2  ;;  %257 = vmatprep.mubr.msk.f32.mxu0 (%p30_p5), %vm310_vm1, %v309_v2  ;;  %v43_v5 = vld [vmem:[%s390_s2] sm:$0xff] (%p30_p5)  ;;  %v142_v7 = vld [vmem:[%s392_s4 + $0x18] sm:$0xff] (%p30_p5)  ;;  %v141_v8 = vld [vmem:[%s392_s4 + $0x10] sm:$0xff] (%p30_p5) }
  0x15   :  { %250 = vmatpush3.msra.mxu0 (%p30_p5), %v46_v1  ;;  %260 = vmatprep.subr.mxu1 (%p30_p5), %v309_v2  ;;  %v140_v9 = vld [vmem:[%s392_s4 + $0x8] sm:$0xff] (%p30_p5)  ;;  %v139_v10 = vld [vmem:[%s392_s4] sm:$0xff] (%p30_p5) }
  0x16   : > { %s36_s29 = scalar_lea.vmem %s389_s1, %s35_s27  ;;  %251 = vmatprep.subr.mxu0 (%p30_p5), %v309_v2  ;;  %268 = vmatprep.mubr.msk.f32.mxu1 (%p30_p5), %vm310_vm1, %v309_v2  ;;  %v236_v11 = vld [vmem:[%s391_s3] ss:$0 sm:$0xff] (%p30_p5) }
  0x17   : > { %v37_v0 = vld [vmem:[%s36_s29] sm:$0x1]  ;;  %252 = vmatpush3.msra.mxu0 (%p30_p5), %v45_v3  ;;  %261 = vmatpush3.msra.mxu1 (%p30_p5), %v142_v7 }
  0x18   : > { %40 = vst.msk [vmem:[%s38_s30] sm:$0x1] %vm39_vm0, %v37_v0  ;;  %253 = vmatprep.subr.mxu0 (%p30_p5), %v309_v2  ;;  %262 = vmatprep.subr.mxu1 (%p30_p5), %v309_v2  ;;  %v238_v25 = vld [vmem:[%s393_s5] ss:$0 sm:$0xff] (%p30_p5) }
  0x19   :  { %254 = vmatpush3.msra.mxu0 %v44_v4  ;;  %263 = vmatpush3.msra.mxu1 %v141_v8 }
  0x1a   :  { %255 = vmatprep.subr.mxu0 %v309_v2  ;;  %264 = vmatprep.subr.mxu1 %v309_v2 }
  0x1b   :  { %256 = vmatpush3.msra.mxu0 %v43_v5  ;;  %265 = vmatpush3.msra.mxu1 %v140_v9 }
  0x1c   :  { %266 = vmatprep.subr.mxu1 %v309_v2 }
  0x1d   :  { %267 = vmatpush3.msra.mxu1 %v139_v10 }
  0x1f   :  { %v41_v6 = vld [vmem:[#allocation2] sm:$0xff] }
  0x20   :  { %258 = vmatmul.mubr.msk.f32.vlgmr.msra.gmra.mxu0 %vm47_vm2, %v41_v6 }
  0xe0   :  { %v117_v12 = vpop.f32.mrf.mxu0 }
  0xe1   :  { %v127_v13 = vadd.f32 %v236_v11, %v117_v12 }
  0xe2   :  { %v259_v14 = vpop.f32.mrf.mxu0 }
  0xe3   :  { %v128_v15 = vmin.f32 %v127_v13, 20.0 }
  0xe5   :  { %v129_v16 = vmul.f32 1.442695, %v128_v15 }
  0xe7   :  { %282 = vpow2.f32 %v129_v16 }
  0xf4   :  { %v283_v17 = vpop.eup %282 }
  0xf5   :  { %v131_v18 = vadd.f32 2.0, %v283_v17 }
  0xf7   :  { %v132_v19 = vmul.f32 %v283_v17, %v131_v18 }
  0xf9   :  { %v134_v20 = vadd.f32 2.0, %v132_v19  ;;  %v133_v21 = vmul.f32 %v132_v19, %v127_v13 }
  0xfb   :  { %284 = vrcp.f32 %v134_v20 }
 0x108   :  { %v285_v22 = vpop.eup %284 }
 0x109   :  { %v136_v23 = vmul.f32 %v285_v22, %v133_v21 }
 0x10b   :  { %v137_v24 = vadd.f32 %v136_v23, %v41_v6 }
 0x10d   :  { %269 = vmatmul.mubr.msk.f32.vlgmr.msra.gmra.mxu1 %vm47_vm2, %v137_v24 }
 0x1cd   :  { %v212_v26 = vpop.f32.mrf.mxu1 }
 0x1ce   :  { %v222_v27 = vadd.f32 %v238_v25, %v212_v26 }
 0x1cf   :  { %v270_v28 = vpop.f32.mrf.mxu1 }
 0x1d0   :  { %223 = vst.msk [vmem:[%s394_s6] sm:$0xff] %vm47_vm2, %v222_v27 }

// kernel: fwd.12
= control target key start
LH: loop header
LB: loop body
LE: loop exit
PB: predicated region body
PF: predicated region fallthrough
CT: control target
= control target key end

     0   :  { %vm36_vm0 = vcmask 261120   ;;  %s922_s2 = inlined_call_operand.vmem [shape: f32[2,2,32,32], index: 2, kind: input, shape index: {}]   ;;  %s923_s1 = inlined_call_operand.vmem [shape: f32[16,32], index: 1, kind: input, shape index: {}]   ;;  %s924_s0 = inlined_call_operand.vmem [shape: f32[16,32], index: 0, kind: input, shape index: {}]   ;;  %s925_s4 = inlined_call_operand.vmem [shape: f32[2,1,32,32], index: 4, kind: input, shape index: {}]   ;;  %s926_s3 = inlined_call_operand.vmem [shape: f32[2,1,32], index: 3, kind: input, shape index: {}]   ;;  %s927_s5 = inlined_call_operand.vmem [shape: f32[1,1,32], index: 5, kind: input, shape index: {}]   ;;  %s928_s6 = inlined_call_operand.vmem [shape: f32[16,32], index: 6, kind: output, shape index: {}]  }
   0x1   :  { %v607_v0 = vld [vmem:[%s922_s2 + $0x58] sm:$0xff]  ;;  %v606_v2 = vld [vmem:[%s922_s2 + $0x50] sm:$0xff]  ;;  %v605_v4 = vld [vmem:[%s922_s2 + $0x48] sm:$0xff] }
   0x2   :  { %v30_v1 = vld [vmem:[%s922_s2 + $0x18] sm:$0xff]  ;;  %672 = vmatprep.subr.mxu0 %v607_v0  ;;  %v29_v3 = vld [vmem:[%s922_s2 + $0x10] sm:$0xff]  ;;  %v28_v5 = vld [vmem:[%s922_s2 + $0x8] sm:$0xff] }
   0x3   :  { %683 = vmatprep.subr.mxu1 %v30_v1  ;;  %673 = vmatpush3.msra.mxu0 %v607_v0  ;;  %v604_v6 = vld [vmem:[%s922_s2 + $0x40] sm:$0xff]  ;;  %v826_v10 = vld [vmem:[%s923_s1 + $0x8] sm:$0xff]  ;;  %v620_v12 = vld [vmem:[%s922_s2 + $0x78] sm:$0xff] }
   0x4   :  { %684 = vmatpush3.msra.mxu1 %v30_v1  ;;  %674 = vmatprep.subr.mxu0 %v606_v2  ;;  %v27_v7 = vld [vmem:[%s922_s2] sm:$0xff]  ;;  %v831_v11 = vld [vmem:[%s924_s0 + $0x8] sm:$0xff]  ;;  %v616_v13 = vld [vmem:[%s922_s2 + $0x38] sm:$0xff] }
   0x5   :  { %685 = vmatprep.subr.mxu1 %v29_v3  ;;  %675 = vmatpush3.msra.mxu0 %v606_v2  ;;  %v816_v8 = vld [vmem:[%s923_s1] sm:$0xff]  ;;  %v619_v14 = vld [vmem:[%s922_s2 + $0x70] sm:$0xff]  ;;  %v618_v16 = vld [vmem:[%s922_s2 + $0x68] sm:$0xff] }
   0x6   :  { %686 = vmatpush3.msra.mxu1 %v29_v3  ;;  %676 = vmatprep.subr.mxu0 %v605_v4  ;;  %v821_v9 = vld [vmem:[%s924_s0] sm:$0xff]  ;;  %v615_v15 = vld [vmem:[%s922_s2 + $0x30] sm:$0xff]  ;;  %v614_v17 = vld [vmem:[%s922_s2 + $0x28] sm:$0xff] }
   0x7   :  { %687 = vmatprep.subr.mxu1 %v28_v5  ;;  %677 = vmatpush3.msra.mxu0 %v605_v4  ;;  %v617_v18 = vld [vmem:[%s922_s2 + $0x60] sm:$0xff]  ;;  %v421_v20 = vld [vmem:[%s925_s4 + $0x18] sm:$0xff]  ;;  %v420_v21 = vld [vmem:[%s925_s4 + $0x10] sm:$0xff] }
   0x8   :  { %688 = vmatpush3.msra.mxu1 %v28_v5  ;;  %678 = vmatprep.subr.mxu0 %v604_v6  ;;  %v613_v19 = vld [vmem:[%s922_s2 + $0x20] sm:$0xff]  ;;  %v419_v22 = vld [vmem:[%s925_s4 + $0x8] sm:$0xff]  ;;  %v630_v24 = vld [vmem:[%s925_s4 + $0x38] sm:$0xff] }
   0x9   :  { %689 = vmatprep.subr.mxu1 %v27_v7  ;;  %679 = vmatpush3.msra.mxu0 %v604_v6  ;;  %v418_v23 = vld [vmem:[%s925_s4] sm:$0xff]  ;;  %v629_v25 = vld [vmem:[%s925_s4 + $0x30] sm:$0xff]  ;;  %v628_v26 = vld [vmem:[%s925_s4 + $0x28] sm:$0xff] }
   0xa   :  { %680 = vmatprep.mubr.msk.f32.mxu0 %vm36_vm0, %v816_v8  ;;  %690 = vmatpush3.msra.mxu1 %v27_v7  ;;  %v627_v27 = vld [vmem:[%s925_s4 + $0x20] sm:$0xff] }
   0xb   :  { %691 = vmatprep.mubr.msk.f32.mxu1 %vm36_vm0, %v821_v9  ;;  %681 = vmatmul.mubr.msk.f32.vlgmr.msra.gmra.mxu0 %vm36_vm0, %v826_v10  ;;  %v612_v30 = vld [vmem:[%s926_s3] ss:$0 sm:$0xff]  ;;  %v626_v43 = vld [vmem:[%s926_s3 + $0x1] ss:$0 sm:$0xff] }
   0xc   :  { %692 = vmatmul.mubr.msk.f32.vlgmr.msra.gmra.mxu1 %vm36_vm0, %v831_v11  ;;  %694 = vmatprep.subr.mxu0 %v620_v12 }
   0xd   :  { %705 = vmatprep.subr.mxu1 %v616_v13  ;;  %695 = vmatpush3.msra.mxu0 %v620_v12 }
   0xe   :  { %706 = vmatpush3.msra.mxu1 %v616_v13  ;;  %696 = vmatprep.subr.mxu0 %v619_v14 }
   0xf   :  { %707 = vmatprep.subr.mxu1 %v615_v15  ;;  %697 = vmatpush3.msra.mxu0 %v619_v14 }
  0x10   :  { %708 = vmatpush3.msra.mxu1 %v615_v15  ;;  %698 = vmatprep.subr.mxu0 %v618_v16 }
  0x11   :  { %709 = vmatprep.subr.mxu1 %v614_v17  ;;  %699 = vmatpush3.msra.mxu0 %v618_v16 }
  0x12   :  { %710 = vmatpush3.msra.mxu1 %v614_v17  ;;  %700 = vmatprep.subr.mxu0 %v617_v18 }
  0x13   :  { %711 = vmatprep.subr.mxu1 %v613_v19  ;;  %701 = vmatpush3.msra.mxu0 %v617_v18 }
  0x14   :  { %702 = vmatprep.mubr.msk.f32.mxu0 %vm36_vm0, %v816_v8  ;;  %712 = vmatpush3.msra.mxu1 %v613_v19 }
  0x15   :  { %713 = vmatprep.mubr.msk.f32.mxu1 %vm36_vm0, %v821_v9  ;;  %703 = vmatmul.mubr.msk.f32.vlgmr.msra.gmra.mxu0 %vm36_vm0, %v826_v10 }
  0x16   :  { %714 = vmatmul.mubr.msk.f32.vlgmr.msra.gmra.mxu1 %vm36_vm0, %v831_v11  ;;  %727 = vmatprep.subr.mxu1 %v421_v20 }
  0x17   :  { %728 = vmatpush3.msra.mxu1 %v421_v20  ;;  %716 = vmatprep.subr.mxu0 %v630_v24 }
  0x18   :  { %729 = vmatprep.subr.mxu1 %v420_v21  ;;  %717 = vmatpush3.msra.mxu0 %v630_v24 }
  0x19   :  { %730 = vmatpush3.msra.mxu1 %v420_v21  ;;  %718 = vmatprep.subr.mxu0 %v629_v25 }
  0x1a   :  { %731 = vmatprep.subr.mxu1 %v419_v22  ;;  %719 = vmatpush3.msra.mxu0 %v629_v25 }
  0x1b   :  { %732 = vmatpush3.msra.mxu1 %v419_v22  ;;  %720 = vmatprep.subr.mxu0 %v628_v26 }
  0x1c   :  { %733 = vmatprep.subr.mxu1 %v418_v23  ;;  %721 = vmatpush3.msra.mxu0 %v628_v26  ;;  %v635_v26 = vld [vmem:[%s927_s5] ss:$0 sm:$0xff] }
  0x1d   :  { %734 = vmatpush3.msra.mxu1 %v418_v23  ;;  %722 = vmatprep.subr.mxu0 %v627_v27 }
  0x1e   :  { %723 = vmatpush3.msra.mxu0 %v627_v27 }
  0xcb   :  { %v682_v28 = vpop.f32.mrf.mxu0 }
  0xcc   :  { %v693_v29 = vpop.f32.mrf.mxu1 }
  0xcd   :  { %v196_v31 = vadd.f32 %v693_v29, %v682_v28  ;;  %v109_v32 = vpop.f32.mrf.mxu0 }
  0xce   :  { %v190_v33 = vpop.f32.mrf.mxu1 }
  0xcf   :  { %v207_v34 = vadd.f32 %v612_v30, %v196_v31  ;;  %v191_v35 = vadd.f32 %v190_v33, %v109_v32 }
  0xd1   :  { %v379_v36 = vmin.f32 %v207_v34, 20.0  ;;  %v206_v37 = vadd.f32 %v612_v30, %v191_v35 }
  0xd3   :  { %v382_v38 = vmul.f32 1.442695, %v379_v36  ;;  %v378_v39 = vmin.f32 %v206_v37, 20.0 }
  0xd5   :  { %738 = vpow2.f32 %v382_v38  ;;  %v380_v40 = vmul.f32 1.442695, %v378_v39  ;;  %v704_v41 = vpop.f32.mrf.mxu0 }
  0xd6   :  { %v715_v42 = vpop.f32.mrf.mxu1 }
  0xd7   :  { %740 = vpow2.f32 %v380_v40  ;;  %v365_v44 = vadd.f32 %v715_v42, %v704_v41  ;;  %v284_v45 = vpop.f32.mrf.mxu0 }
  0xd8   :  { %v359_v46 = vpop.f32.mrf.mxu1 }
  0xd9   :  { %v377_v47 = vadd.f32 %v626_v43, %v365_v44  ;;  %v360_v48 = vadd.f32 %v359_v46, %v284_v45 }
  0xdb   :  { %v399_v49 = vmin.f32 %v377_v47, 20.0  ;;  %v376_v50 = vadd.f32 %v626_v43, %v360_v48 }
  0xdd   :  { %v402_v51 = vmul.f32 1.442695, %v399_v49  ;;  %v398_v52 = vmin.f32 %v376_v50, 20.0 }
  0xdf   :  { %742 = vpow2.f32 %v402_v51  ;;  %v400_v53 = vmul.f32 1.442695, %v398_v52 }
  0xe1   :  { %744 = vpow2.f32 %v400_v53 }
  0xe2   :  { %v739_v54 = vpop.eup %738 }
  0xe3   :  { %v385_v55 = vadd.f32 2.0, %v739_v54 }
  0xe4   :  { %v741_v56 = vpop.eup %740 }
  0xe5   :  { %v387_v57 = vmul.f32 %v739_v54, %v385_v55  ;;  %v384_v58 = vadd.f32 2.0, %v741_v56 }
  0xe7   :  { %v391_v59 = vadd.f32 2.0, %v387_v57  ;;  %v386_v60 = vmul.f32 %v741_v56, %v384_v58  ;;  %v389_v7 = vmul.f32 %v387_v57, %v207_v34 }
  0xe9   :  { %746 = vrcp.f32 %v391_v59  ;;  %v390_v61 = vadd.f32 2.0, %v386_v60  ;;  %v388_v12 = vmul.f32 %v386_v60, %v206_v37 }
  0xeb   :  { %748 = vrcp.f32 %v390_v61 }
  0xec   :  { %v743_v62 = vpop.eup %742 }
  0xed   :  { %v405_v63 = vadd.f32 2.0, %v743_v62 }
  0xee   :  { %v745_v0 = vpop.eup %744 }
  0xef   :  { %v407_v1 = vmul.f32 %v743_v62, %v405_v63  ;;  %v404_v2 = vadd.f32 2.0, %v745_v0 }
  0xf1   :  { %v411_v3 = vadd.f32 2.0, %v407_v1  ;;  %v406_v4 = vmul.f32 %v745_v0, %v404_v2  ;;  %v409_v19 = vmul.f32 %v407_v1, %v377_v47 }
  0xf3   :  { %750 = vrcp.f32 %v411_v3  ;;  %v410_v5 = vadd.f32 2.0, %v406_v4  ;;  %v408_v20 = vmul.f32 %v406_v4, %v376_v50 }
  0xf5   :  { %752 = vrcp.f32 %v410_v5 }
  0xf6   :  { %v747_v6 = vpop.eup %746 }
  0xf7   :  { %v395_v14 = vmul.f32 %v747_v6, %v389_v7 }
  0xf8   :  { %v749_v13 = vpop.eup %748 }
  0xf9   :  { %v393_v15 = vmul.f32 %v749_v13, %v388_v12  ;;  %v397_v17 = vadd.f32 %v395_v14, %v831_v11 }
  0xfb   :  { %v396_v16 = vadd.f32 %v393_v15, %v821_v9 }
  0xfd   :  { %735 = vmatprep.mubr.msk.f32.mxu1 %vm36_vm0, %v396_v16 }
  0xfe   :  { %736 = vmatmul.mubr.msk.f32.vlgmr.msra.gmra.mxu1 %vm36_vm0, %v397_v17 }
 0x100   :  { %v751_v18 = vpop.eup %750 }
 0x101   :  { %v415_v22 = vmul.f32 %v751_v18, %v409_v19 }
 0x102   :  { %v753_v21 = vpop.eup %752 }
 0x103   :  { %v413_v23 = vmul.f32 %v753_v21, %v408_v20  ;;  %v417_v25 = vadd.f32 %v415_v22, %v826_v10 }
 0x105   :  { %v416_v24 = vadd.f32 %v413_v23, %v816_v8 }
 0x107   :  { %724 = vmatprep.mubr.msk.f32.mxu0 %vm36_vm0, %v416_v24 }
 0x108   :  { %725 = vmatmul.mubr.msk.f32.vlgmr.msra.gmra.mxu0 %vm36_vm0, %v417_v25 }
 0x1be   :  { %v737_v9 = vpop.f32.mrf.mxu1 }
 0x1c0   :  { %v580_v28 = vpop.f32.mrf.mxu1 }
 0x1c8   :  { %v726_v11 = vpop.f32.mrf.mxu0 }
 0x1c9   :  { %v586_v27 = vadd.f32 %v737_v9, %v726_v11 }
 0x1ca   :  { %v499_v29 = vpop.f32.mrf.mxu0 }
 0x1cb   :  { %v597_v30 = vadd.f32 %v635_v26, %v586_v27  ;;  %v581_v31 = vadd.f32 %v580_v28, %v499_v29 }
 0x1cd   :  { %599 = vst.msk [vmem:[%s928_s6 + $0x8] sm:$0xff] %vm36_vm0, %v597_v30  ;;  %v596_v8 = vadd.f32 %v635_v26, %v581_v31 }
 0x1cf   :  { %598 = vst.msk [vmem:[%s928_s6] sm:$0xff] %vm36_vm0, %v596_v8 }

// kernel: fwd.11
= control target key start
LH: loop header
LB: loop body
LE: loop exit
PB: predicated region body
PF: predicated region fallthrough
CT: control target
= control target key end

     0   :  { %s1174_s0 = inlined_call_operand.vmem [shape: s32[16], index: 0, kind: input, shape index: {}]   ;;  %s1175_s1 = inlined_call_operand.vmem [shape: f32[16,32], index: 1, kind: input, shape index: {}]   ;;  %s1176_s2 = inlined_call_operand.hbm [shape: f32[2,2,32,32], index: 2, kind: input, shape index: {}]   ;;  %s1177_s3 = inlined_call_operand.vmem [shape: f32[2,1,32], index: 3, kind: input, shape index: {}]   ;;  %s1178_s4 = inlined_call_operand.hbm [shape: f32[2,2,32,32], index: 4, kind: input, shape index: {}]   ;;  %s1179_s5 = inlined_call_operand.vmem [shape: f32[2,1,32], index: 5, kind: input, shape index: {}]   ;;  %s1180_s6 = inlined_call_operand.vmem [shape: f32[2,8,32], index: 6, kind: output, shape index: {}]  }
   0x1   :  { %s11_s23 = sshll.u32 %s1174_s0, 4  ;;  %s12_s23 = int_to_ptr.vmem [resolvable:$true] %s11_s23 }
   0x2   :  { %s955_s24 = scalar_lea.vmem %s12_s23, 16  ;;  %p960_p1 = scmp.lt.s32.totalorder %s12_s23, %s12_s23 }
   0x3   :  { %p956_p0 = scmp.ne.s32.totalorder %s12_s23, %s955_s24  ;;  %p961_p2 = scmp.lt.s32.totalorder %s955_s24, %s955_s24 }
   0x5   :  { %p962_p3 = por %p961_p2, %p960_p1 }
   0x7   :  { %p963_p4 = pnand %p962_p3, %p956_p0 }
   0x9   :  { %966 = shalt.err (!%p963_p4)  }
   0xa   :  { %s1029_s25 = smov [#allocation5]  }
   0xb   :  { %14 = dma.vmem_to_smem %s12_s23, 16, %s1029_s25, [#allocation4] }
   0xc   :  { %1015 = dma.done.wait [#allocation4], 16 }
   0xd   :  { %1016 = vsyncadd [#allocation4], 4294967280 }
   0xe   :  { %16 = sfence }
   0xf   :  { %17 = vsyncpa [#allocation7], 0 }
  0x10   :  { %18 = vsyncpa [#allocation9], 0  ;;  %s1030_s26 = smov [#allocation6]  }
  0x11   :  { %s26_s27 = sshll.u32 %s1030_s26, 4  ;;  %s27_s27 = int_to_ptr.vmem [resolvable:$true] %s26_s27 }
  0x12   :  { %s975_s28 = scalar_lea.vmem %s27_s27, 2048  ;;  %p980_p6 = scmp.lt.s32.totalorder %s27_s27, %s27_s27 }
  0x13   :  { %p976_p5 = scmp.ne.s32.totalorder %s27_s27, %s975_s28  ;;  %p981_p7 = scmp.lt.s32.totalorder %s975_s28, %s975_s28 }
  0x15   :  { %p982_p8 = por %p981_p7, %p980_p6 }
  0x17   :  { %p983_p9 = pnand %p982_p8, %p976_p5 }
  0x19   :  { %986 = shalt.err (!%p983_p9)
}
  0x1a   :  { %s1031_s0 = smov 128   ;;  %s1032_s29 = smov 8  }
  0x1b   :  { %32 = dma.hbm_to_vmem [thread:$0]  %s1176_s2, 2048, %s27_s27, [#allocation7], %s1031_s0, %s1031_s0, %s1032_s29  }
  0x1c   :  { %s1033_s8 = smov [#allocation8]  }
  0x1d   :  { %s40_s9 = sshll.u32 %s1033_s8, 4  ;;  %s41_s9 = int_to_ptr.vmem [resolvable:$true] %s40_s9 }
  0x1e   :  { %s995_s10 = scalar_lea.vmem %s41_s9, 2048  ;;  %p1000_p11 = scmp.lt.s32.totalorder %s41_s9, %s41_s9 }
  0x1f   :  { %p996_p10 = scmp.ne.s32.totalorder %s41_s9, %s995_s10  ;;  %p1001_p12 = scmp.lt.s32.totalorder %s995_s10, %s995_s10 }
  0x21   :  { %p1002_p13 = por %p1001_p12, %p1000_p11 }
  0x23   :  { %p1003_p0 = pnand %p1002_p13, %p996_p10 }
  0x25   :  { %1006 = shalt.err (!%p1003_p0)
}
  0x26   :  { %46 = dma.hbm_to_vmem [thread:$0]  %s1178_s4, 2048, %s41_s9, [#allocation9], %s1031_s0, %s1031_s0, %s1032_s29  }
  0x27   :  { %1017 = dma.done.wait [#allocation7], 2048  }
  0x28   :  { %1018 = vsyncadd [#allocation7], 4294965248 }
  0x29   :  { %1019 = dma.done.wait [#allocation9], 2048  }
  0x2a   :  { %1020 = vsyncadd [#allocation9], 4294965248  ;;  %s1021_s13 = smov 0  }
  0x2b LB: > { %s779_s2 = sshll.u32 %s1023_s13, 1  ;;  %vm68_vm0 = vcmask 253952   ;;  %s67_s18 = scalar_lea.vmem [#allocation2], %s1023_s13  ;;  %s1023_s13 = sphi %s1021_s13, %s61_s13  }
  0x2c   : > { %s64_s14 = sld [smem:[#allocation5 + %s779_s2]]  ;;  %s61_s13 = sadd.s32 1, %s1023_s13  }
  0x2d   : > { %p58_p1 = scmp.ge.s32.totalorder %s61_s13, 8  }
  0x2e   :  { %s1025_s4 = smov (%p58_p1), 0  }
  0x30   :  { %60 = sbr.rel (!%p58_p1) target bundleno = 43 (0x2b), region = 75 }
  0x32   : > { %s65_s17 = scalar_lea.vmem %s1175_s1, %s64_s14 }
  0x33   : > { %v66_v0 = vld [vmem:[%s65_s17] sm:$0x1] }
  0x34   : > { %69 = vst.msk [vmem:[%s67_s18] sm:$0x1] %vm68_vm0, %v66_v0 }
  0x35 LB: > { %s780_s19 = sshll.u32 %s1027_s4, 1  ;;  %s82_s25 = scalar_lea.vmem [#allocation3], %s1027_s4  ;;  %s1027_s4 = sphi %s1025_s4, %s75_s4  }
  0x36   : > { %s78_s20 = sadd.s32 1, %s780_s19  ;;  %s75_s4 = sadd.s32 1, %s1027_s4  }
  0x37   : > { %s79_s21 = sld [smem:[#allocation5 + %s78_s20]]  ;;  %p72_p2 = scmp.ge.s32.totalorder %s75_s4, 8  }
  0x38   :  { %v91_v2 = vld [vmem:[#allocation6 + $0x18] sm:$0xff] (%p72_p2)  ;;  %v1034_v4 = vmov (%p72_p2), 0.0   ;;  %v90_v5 = vld [vmem:[#allocation6 + $0x10] sm:$0xff] (%p72_p2)  ;;  %v89_v7 = vld [vmem:[#allocation6 + $0x8] sm:$0xff] (%p72_p2)  ;;  %vm92_vm1 = vcmask (%p72_p2), 261120   ;;  %vm1035_vm2 = vmmov (%p72_p2), 0  }
  0x39   :  { %v177_v3 = vld [vmem:[#allocation6 + $0x58] sm:$0xff] (%p72_p2)  ;;  %836 = vmatprep.subr.mxu0 (%p72_p2), %v1034_v4  ;;  %847 = vmatprep.subr.mxu1 (%p72_p2), %v1034_v4  ;;  %v176_v6 = vld [vmem:[#allocation6 + $0x50] sm:$0xff] (%p72_p2)  ;;  %v175_v8 = vld [vmem:[#allocation6 + $0x48] sm:$0xff] (%p72_p2) }
  0x3a   :  { %837 = vmatpush3.msra.mxu0 (%p72_p2), %v91_v2  ;;  %848 = vmatpush3.msra.mxu1 (%p72_p2), %v177_v3  ;;  %v88_v9 = vld [vmem:[#allocation6] sm:$0xff] (%p72_p2)  ;;  %v268_v13 = vld [vmem:[#allocation6 + $0x38] sm:$0xff] (%p72_p2)  ;;  %v267_v15 = vld [vmem:[#allocation6 + $0x30] sm:$0xff] (%p72_p2) }
  0x3b   :  { %74 = sbr.rel (!%p72_p2) target bundleno = 53 (0x35), region = 86  ;;  %838 = vmatprep.subr.mxu0 (%p72_p2), %v1034_v4  ;;  %849 = vmatprep.subr.mxu1 (%p72_p2), %v1034_v4  ;;  %v174_v10 = vld [vmem:[#allocation6 + $0x40] sm:$0xff] (%p72_p2)  ;;  %v1094_v11 = vld [vmem:[#allocation2] sm:$0xff] (%p72_p2)  ;;  %v350_v14 = vld [vmem:[#allocation6 + $0x78] sm:$0xff] (%p72_p2) }
  0x3c   :  { %839 = vmatpush3.msra.mxu0 (%p72_p2), %v90_v5  ;;  %850 = vmatpush3.msra.mxu1 (%p72_p2), %v176_v6  ;;  %v349_v16 = vld [vmem:[#allocation6 + $0x70] sm:$0xff] (%p72_p2)  ;;  %v266_v17 = vld [vmem:[#allocation6 + $0x28] sm:$0xff] (%p72_p2)  ;;  %v265_v19 = vld [vmem:[#allocation6 + $0x20] sm:$0xff] (%p72_p2) }
  0x3d   : > { %s80_s24 = scalar_lea.vmem %s1175_s1, %s79_s21  ;;  %840 = vmatprep.subr.mxu0 (%p72_p2), %v1034_v4  ;;  %851 = vmatprep.subr.mxu1 (%p72_p2), %v1034_v4  ;;  %v348_v18 = vld [vmem:[#allocation6 + $0x68] sm:$0xff] (%p72_p2)  ;;  %v347_v20 = vld [vmem:[#allocation6 + $0x60] sm:$0xff] (%p72_p2)  ;;  %v436_v21 = vld [vmem:[#allocation8 + $0x18] sm:$0xff] (%p72_p2) }
  0x3e   : > { %v81_v1 = vld [vmem:[%s80_s24] sm:$0x1]  ;;  %841 = vmatpush3.msra.mxu0 (%p72_p2), %v89_v7  ;;  %852 = vmatpush3.msra.mxu1 (%p72_p2), %v175_v8  ;;  %v434_v23 = vld [vmem:[#allocation8 + $0x8] sm:$0xff] (%p72_p2)  ;;  %v433_v24 = vld [vmem:[#allocation8] sm:$0xff] (%p72_p2) }
  0x3f   : > { %84 = vst.msk [vmem:[%s82_s25] sm:$0x1] %vm68_vm0, %v81_v1  ;;  %842 = vmatprep.subr.mxu0 (%p72_p2), %v1034_v4  ;;  %853 = vmatprep.subr.mxu1 (%p72_p2), %v1034_v4  ;;  %v435_v22 = vld [vmem:[#allocation8 + $0x10] sm:$0xff] (%p72_p2)  ;;  %v521_v25 = vld [vmem:[#allocation8 + $0x58] sm:$0xff] (%p72_p2)  ;;  %v519_v27 = vld [vmem:[#allocation8 + $0x48] sm:$0xff] (%p72_p2) }
  0x40   :  { %843 = vmatpush3.msra.mxu0 %v88_v9  ;;  %844 = vmatprep.mubr.msk.f32.mxu0 %vm1035_vm2, %v1034_v4  ;;  %v520_v26 = vld [vmem:[#allocation8 + $0x50] sm:$0xff]  ;;  %v518_v28 = vld [vmem:[#allocation8 + $0x40] sm:$0xff]  ;;  %v603_v59 = vld [vmem:[#allocation8 + $0x38] sm:$0xff] }
  0x41   :  { %854 = vmatpush3.msra.mxu1 %v174_v10  ;;  %845 = vmatmul.mubr.msk.f32.vlgmr.msra.gmra.mxu0 %vm92_vm1, %v1094_v11  ;;  %v782_v29 = vld [vmem:[%s1177_s3] ss:$0 sm:$0xff]  ;;  %v786_v38 = vld [vmem:[%s1177_s3 + $0x1] ss:$0 sm:$0xff]  ;;  %v601_v61 = vld [vmem:[#allocation8 + $0x28] sm:$0xff] }
  0x42   :  { %855 = vmatprep.mubr.msk.f32.mxu1 %vm1035_vm2, %v1034_v4  ;;  %858 = vmatprep.subr.mxu0 %v1034_v4  ;;  %v602_v60 = vld [vmem:[#allocation8 + $0x30] sm:$0xff]  ;;  %v600_v62 = vld [vmem:[#allocation8 + $0x20] sm:$0xff]  ;;  %v685_v3 = vld [vmem:[#allocation8 + $0x78] sm:$0xff] }
  0x43   :  { %869 = vmatprep.subr.mxu1 %v1034_v4  ;;  %859 = vmatpush3.msra.mxu0 %v268_v13  ;;  %v684_v5 = vld [vmem:[#allocation8 + $0x70] sm:$0xff]  ;;  %v683_v6 = vld [vmem:[#allocation8 + $0x68] sm:$0xff]  ;;  %v682_v7 = vld [vmem:[#allocation8 + $0x60] sm:$0xff] }
  0x44   :  { %860 = vmatprep.subr.mxu0 %v1034_v4  ;;  %866 = vmatprep.mubr.msk.f32.mxu0 %vm1035_vm2, %v1034_v4  ;;  %v789_v10 = vld [vmem:[%s1179_s5] ss:$0 sm:$0xff] }
  0x45   :  { %861 = vmatpush3.msra.mxu0 %v267_v15 }
  0x46   :  { %v1100_v12 = vld [vmem:[#allocation3] sm:$0xff]  ;;  %862 = vmatprep.subr.mxu0 %v1034_v4 }
  0x47   :  { %856 = vmatmul.mubr.msk.f32.vlgmr.msra.gmra.mxu1 %vm92_vm1, %v1100_v12  ;;  %863 = vmatpush3.msra.mxu0 %v266_v17 }
  0x48   :  { %870 = vmatpush3.msra.mxu1 %v350_v14  ;;  %864 = vmatprep.subr.mxu0 %v1034_v4 }
  0x49   :  { %871 = vmatprep.subr.mxu1 %v1034_v4  ;;  %865 = vmatpush3.msra.mxu0 %v265_v19 }
  0x4a   :  { %872 = vmatpush3.msra.mxu1 %v349_v16  ;;  %877 = vmatprep.mubr.msk.f32.mxu1 %vm1035_vm2, %v1034_v4 }
  0x4b   :  { %873 = vmatprep.subr.mxu1 %v1034_v4  ;;  %867 = vmatmul.mubr.msk.f32.vlgmr.msra.gmra.mxu0 %vm92_vm1, %v1094_v11 }
  0x4c   :  { %874 = vmatpush3.msra.mxu1 %v348_v18  ;;  %880 = vmatprep.subr.mxu0 %v1034_v4 }
  0x4d   :  { %875 = vmatprep.subr.mxu1 %v1034_v4  ;;  %888 = vmatprep.mubr.msk.f32.mxu0 %vm1035_vm2, %v1034_v4 }
  0x4e   :  { %876 = vmatpush3.msra.mxu1 %v347_v20  ;;  %881 = vmatpush3.msra.mxu0 %v436_v21 }
  0x4f   :  { %878 = vmatmul.mubr.msk.f32.vlgmr.msra.gmra.mxu1 %vm92_vm1, %v1100_v12  ;;  %891 = vmatprep.subr.mxu1 %v1034_v4 }
  0x50   :  { %899 = vmatprep.mubr.msk.f32.mxu1 %vm1035_vm2, %v1034_v4  ;;  %882 = vmatprep.subr.mxu0 %v1034_v4 }
  0x51   :  { %883 = vmatpush3.msra.mxu0 %v435_v22  ;;  %892 = vmatpush3.msra.mxu1 %v521_v25 }
  0x52   :  { %884 = vmatprep.subr.mxu0 %v1034_v4  ;;  %893 = vmatprep.subr.mxu1 %v1034_v4 }
  0x53   :  { %885 = vmatpush3.msra.mxu0 %v434_v23  ;;  %894 = vmatpush3.msra.mxu1 %v520_v26 }
  0x54   :  { %886 = vmatprep.subr.mxu0 %v1034_v4  ;;  %895 = vmatprep.subr.mxu1 %v1034_v4 }
  0x55   :  { %887 = vmatpush3.msra.mxu0 %v433_v24  ;;  %896 = vmatpush3.msra.mxu1 %v519_v27 }
  0x56   :  { %902 = vmatprep.subr.mxu0 %v1034_v4  ;;  %897 = vmatprep.subr.mxu1 %v1034_v4 }
  0x57   :  { %898 = vmatpush3.msra.mxu1 %v518_v28 }
  0x58   :  { %913 = vmatprep.subr.mxu1 %v1034_v4 }
 0x101   :  { %v162_v30 = vpop.f32.mrf.mxu0 }
 0x102   :  { %v172_v31 = vadd.f32 %v782_v29, %v162_v30 }
 0x103   :  { %v846_v33 = vpop.f32.mrf.mxu0 }
 0x107   :  { %v247_v32 = vpop.f32.mrf.mxu1 }
 0x108   :  { %v251_v34 = vadd.f32 %v247_v32, %v172_v31 }
 0x109   :  { %v857_v35 = vpop.f32.mrf.mxu1 }
 0x10a   :  { %v252_v36 = vmin.f32 %v251_v34, 20.0 }
 0x10b   :  { %v335_v39 = vpop.f32.mrf.mxu0 }
 0x10c   :  { %v253_v37 = vmul.f32 1.442695, %v252_v36  ;;  %v345_v41 = vadd.f32 %v786_v38, %v335_v39 }
 0x10d   :  { %v868_v42 = vpop.f32.mrf.mxu0 }
 0x10e   :  { %947 = vpow2.f32 %v253_v37 }
 0x10f   :  { %v417_v40 = vpop.f32.mrf.mxu1 }
 0x110   :  { %v421_v44 = vadd.f32 %v417_v40, %v345_v41 }
 0x111   :  { %v879_v43 = vpop.f32.mrf.mxu1 }
 0x112   :  { %v422_v45 = vmin.f32 %v421_v44, 20.0 }
 0x114   :  { %v423_v46 = vmul.f32 1.442695, %v422_v45 }
 0x116   :  { %949 = vpow2.f32 %v423_v46 }
 0x11b   :  { %v948_v47 = vpop.eup %947 }
 0x11c   :  { %v255_v48 = vadd.f32 2.0, %v948_v47 }
 0x11e   :  { %v256_v49 = vmul.f32 %v948_v47, %v255_v48 }
 0x120   :  { %v258_v50 = vadd.f32 2.0, %v256_v49  ;;  %v257_v55 = vmul.f32 %v256_v49, %v251_v34 }
 0x122   :  { %951 = vrcp.f32 %v258_v50 }
 0x123   :  { %v950_v51 = vpop.eup %949 }
 0x124   :  { %v425_v52 = vadd.f32 2.0, %v950_v51 }
 0x126   :  { %v426_v53 = vmul.f32 %v950_v51, %v425_v52 }
 0x128   :  { %v428_v54 = vadd.f32 2.0, %v426_v53  ;;  %v427_v63 = vmul.f32 %v426_v53, %v421_v44 }
 0x12a   :  { %953 = vrcp.f32 %v428_v54 }
 0x12f   :  { %v952_v56 = vpop.eup %951 }
 0x130   :  { %v260_v57 = vmul.f32 %v952_v56, %v257_v55 }
 0x132   :  { %v261_v58 = vadd.f32 %v260_v57, %v1094_v11 }
 0x134   :  { %889 = vmatmul.mubr.msk.f32.vlgmr.msra.gmra.mxu0 %vm92_vm1, %v261_v58 }
 0x135   :  { %903 = vmatpush3.msra.mxu0 %v603_v59  ;;  %910 = vmatprep.mubr.msk.f32.mxu0 %vm1035_vm2, %v1034_v4 }
 0x136   :  { %904 = vmatprep.subr.mxu0 %v1034_v4 }
 0x137   :  { %905 = vmatpush3.msra.mxu0 %v602_v60  ;;  %v954_v0 = vpop.eup %953 }
 0x138   :  { %906 = vmatprep.subr.mxu0 %v1034_v4  ;;  %v430_v1 = vmul.f32 %v954_v0, %v427_v63 }
 0x139   :  { %907 = vmatpush3.msra.mxu0 %v601_v61 }
 0x13a   :  { %908 = vmatprep.subr.mxu0 %v1034_v4  ;;  %v431_v2 = vadd.f32 %v430_v1, %v1100_v12 }
 0x13b   :  { %909 = vmatpush3.msra.mxu0 %v600_v62 }
 0x13c   :  { %911 = vmatmul.mubr.msk.f32.vlgmr.msra.gmra.mxu0 %vm92_vm1, %v261_v58  ;;  %900 = vmatmul.mubr.msk.f32.vlgmr.msra.gmra.mxu1 %vm92_vm1, %v431_v2 }
 0x13d   :  { %914 = vmatpush3.msra.mxu1 %v685_v3  ;;  %921 = vmatprep.mubr.msk.f32.mxu1 %vm1035_vm2, %v1034_v4 }
 0x13e   :  { %915 = vmatprep.subr.mxu1 %v1034_v4 }
 0x13f   :  { %916 = vmatpush3.msra.mxu1 %v684_v5 }
 0x140   :  { %917 = vmatprep.subr.mxu1 %v1034_v4 }
 0x141   :  { %918 = vmatpush3.msra.mxu1 %v683_v6 }
 0x142   :  { %919 = vmatprep.subr.mxu1 %v1034_v4  ;;  %v793_v4 = vld [vmem:[%s1179_s5 + $0x1] ss:$0 sm:$0xff] }
 0x143   :  { %920 = vmatpush3.msra.mxu1 %v682_v7 }
 0x144   :  { %922 = vmatmul.mubr.msk.f32.vlgmr.msra.gmra.mxu1 %vm92_vm1, %v431_v2 }
 0x1f4   :  { %v506_v8 = vpop.f32.mrf.mxu0 }
 0x1f5   :  { %v516_v12 = vadd.f32 %v789_v10, %v506_v8 }
 0x1f6   :  { %v890_v9 = vpop.f32.mrf.mxu0 }
 0x1fc   :  { %v670_v11 = vpop.f32.mrf.mxu0  ;;  %v591_v14 = vpop.f32.mrf.mxu1 }
 0x1fd   :  { %v595_v15 = vadd.f32 %v591_v14, %v516_v12  ;;  %v680_v17 = vadd.f32 %v793_v4, %v670_v11 }
 0x1fe   :  { %v912_v13 = vpop.f32.mrf.mxu0  ;;  %v901_v16 = vpop.f32.mrf.mxu1 }
 0x1ff   :  { %596 = vst.msk [vmem:[%s1180_s6] sm:$0xff] %vm92_vm1, %v595_v15 }
 0x204   :  { %v752_v18 = vpop.f32.mrf.mxu1 }
 0x205   :  { %v756_v19 = vadd.f32 %v752_v18, %v680_v17 }
 0x206   :  { %v923_v20 = vpop.f32.mrf.mxu1 }
 0x207   :  { %795 = vst.msk [vmem:[%s1180_s6 + $0x8] sm:$0xff] %vm92_vm1, %v756_v19 }
 0x208   :  { %763 = vsyncpa [#allocation7], 1 }
 0x209   :  { %764 = vsyncpa [#allocation9], 1 }

// kernel: fwd.13
= control target key start
LH: loop header
LB: loop body
LE: loop exit
PB: predicated region body
PF: predicated region fallthrough
CT: control target
= control target key end

     0   :  { %v247_v0 = vmov 0.0   ;;  %vm248_vm0 = vmmov 0   ;;  %vm32_vm1 = vcmask 261120   ;;  %s318_s1 = inlined_call_operand.vmem [shape: f32[32,32], index: 1, kind: input, shape index: {}]   ;;  %s319_s0 = inlined_call_operand.vmem [shape: f32[8,32], index: 0, kind: input, shape index: {}]   ;;  %s320_s3 = inlined_call_operand.vmem [shape: f32[32,32], index: 3, kind: input, shape index: {}]   ;;  %s321_s2 = inlined_call_operand.vmem [shape: f32[1,32], index: 2, kind: input, shape index: {}]   ;;  %s322_s4 = inlined_call_operand.vmem [shape: f32[1,32], index: 4, kind: input, shape index: {}]   ;;  %s323_s5 = inlined_call_operand.vmem [shape: f32[8,32], index: 5, kind: output, shape index: {}]  }
   0x1   :  { %219 = vmatprep.subr.mxu0 %v247_v0  ;;  %v24_v1 = vld [vmem:[%s318_s1 + $0x18] sm:$0xff]  ;;  %v23_v2 = vld [vmem:[%s318_s1 + $0x10] sm:$0xff]  ;;  %227 = vmatprep.mubr.msk.f32.mxu0 %vm248_vm0, %v247_v0  ;;  %v22_v3 = vld [vmem:[%s318_s1 + $0x8] sm:$0xff] }
   0x2   :  { %220 = vmatpush3.msra.mxu0 %v24_v1  ;;  %230 = vmatprep.subr.mxu1 %v247_v0  ;;  %v21_v4 = vld [vmem:[%s318_s1] sm:$0xff]  ;;  %v119_v6 = vld [vmem:[%s320_s3 + $0x18] sm:$0xff]  ;;  %v118_v7 = vld [vmem:[%s320_s3 + $0x10] sm:$0xff] }
   0x3   :  { %221 = vmatprep.subr.mxu0 %v247_v0  ;;  %238 = vmatprep.mubr.msk.f32.mxu1 %vm248_vm0, %v247_v0  ;;  %v20_v5 = vld [vmem:[%s319_s0] sm:$0xff]  ;;  %v117_v8 = vld [vmem:[%s320_s3 + $0x8] sm:$0xff] }
   0x4   :  { %222 = vmatpush3.msra.mxu0 %v23_v2  ;;  %231 = vmatpush3.msra.mxu1 %v119_v6  ;;  %v116_v9 = vld [vmem:[%s320_s3] sm:$0xff] }
   0x5   :  { %223 = vmatprep.subr.mxu0 %v247_v0  ;;  %232 = vmatprep.subr.mxu1 %v247_v0  ;;  %v205_v10 = vld [vmem:[%s321_s2] ss:$0 sm:$0xff] }
   0x6   :  { %224 = vmatpush3.msra.mxu0 %v22_v3  ;;  %233 = vmatpush3.msra.mxu1 %v118_v7  ;;  %v207_v24 = vld [vmem:[%s322_s4] ss:$0 sm:$0xff] }
   0x7   :  { %225 = vmatprep.subr.mxu0 %v247_v0  ;;  %234 = vmatprep.subr.mxu1 %v247_v0 }
   0x8   :  { %226 = vmatpush3.msra.mxu0 %v21_v4  ;;  %235 = vmatpush3.msra.mxu1 %v117_v8 }
   0x9   :  { %228 = vmatmul.mubr.msk.f32.vlgmr.msra.gmra.mxu0 %vm32_vm1, %v20_v5  ;;  %236 = vmatprep.subr.mxu1 %v247_v0 }
   0xa   :  { %237 = vmatpush3.msra.mxu1 %v116_v9 }
  0xc9   :  { %v102_v11 = vpop.f32.mrf.mxu0 }
  0xca   :  { %v103_v12 = vadd.f32 %v205_v10, %v102_v11 }
  0xcb   :  { %v229_v13 = vpop.f32.mrf.mxu0 }
  0xcc   :  { %v106_v14 = vmin.f32 %v103_v12, 20.0 }
  0xce   :  { %v107_v15 = vmul.f32 1.442695, %v106_v14 }
  0xd0   :  { %243 = vpow2.f32 %v107_v15 }
  0xdd   :  { %v244_v16 = vpop.eup %243 }
  0xde   :  { %v109_v17 = vadd.f32 2.0, %v244_v16 }
  0xe0   :  { %v110_v18 = vmul.f32 %v244_v16, %v109_v17 }
  0xe2   :  { %v112_v19 = vadd.f32 2.0, %v110_v18  ;;  %v111_v20 = vmul.f32 %v110_v18, %v103_v12 }
  0xe4   :  { %245 = vrcp.f32 %v112_v19 }
  0xf1   :  { %v246_v21 = vpop.eup %245 }
  0xf2   :  { %v114_v22 = vmul.f32 %v246_v21, %v111_v20 }
  0xf4   :  { %v115_v23 = vadd.f32 %v114_v22, %v20_v5 }
  0xf6   :  { %239 = vmatmul.mubr.msk.f32.vlgmr.msra.gmra.mxu1 %vm32_vm1, %v115_v23 }
 0x1b6   :  { %v196_v25 = vpop.f32.mrf.mxu1 }
 0x1b7   :  { %v197_v26 = vadd.f32 %v207_v24, %v196_v25 }
 0x1b8   :  { %v240_v27 = vpop.f32.mrf.mxu1 }
 0x1b9   :  { %200 = vst.msk [vmem:[%s323_s5] sm:$0xff] %vm32_vm1, %v197_v26 }

// kernel: fwd.19
= control target key start
LH: loop header
LB: loop body
LE: loop exit
PB: predicated region body
PF: predicated region fallthrough
CT: control target
= control target key end

     0   :  { %vm37_vm0 = vcmask 261120   ;;  %s960_s0 = inlined_call_operand.vmem [shape: f32[16,32], index: 0, kind: input, shape index: {}]   ;;  %s961_s1 = inlined_call_operand.vmem [shape: f32[16,32], index: 1, kind: input, shape index: {}]   ;;  %s962_s2 = inlined_call_operand.vmem [shape: f32[2,2,32,32], index: 2, kind: input, shape index: {}]   ;;  %s963_s3 = inlined_call_operand.vmem [shape: f32[2,1,32], index: 3, kind: input, shape index: {}]   ;;  %s964_s4 = inlined_call_operand.vmem [shape: f32[2,1,32,32], index: 4, kind: input, shape index: {}]   ;;  %s965_s5 = inlined_call_operand.vmem [shape: f32[1,1,32], index: 5, kind: input, shape index: {}]   ;;  %s966_s6 = inlined_call_operand.hbm [shape: f32[16,32], index: 6, kind: output, shape index: {}]  }
   0x1   :  { %v620_v0 = vld [vmem:[%s962_s2 + $0x58] sm:$0xff]  ;;  %v619_v2 = vld [vmem:[%s962_s2 + $0x50] sm:$0xff]  ;;  %v618_v4 = vld [vmem:[%s962_s2 + $0x48] sm:$0xff] }
   0x2   :  { %v31_v1 = vld [vmem:[%s962_s2 + $0x18] sm:$0xff]  ;;  %685 = vmatprep.subr.mxu0 %v620_v0  ;;  %v30_v3 = vld [vmem:[%s962_s2 + $0x10] sm:$0xff]  ;;  %v29_v5 = vld [vmem:[%s962_s2 + $0x8] sm:$0xff] }
   0x3   :  { %696 = vmatprep.subr.mxu1 %v31_v1  ;;  %686 = vmatpush3.msra.mxu0 %v620_v0  ;;  %v617_v6 = vld [vmem:[%s962_s2 + $0x40] sm:$0xff] }
   0x4   :  { %697 = vmatpush3.msra.mxu1 %v31_v1  ;;  %687 = vmatprep.subr.mxu0 %v619_v2  ;;  %v28_v7 = vld [vmem:[%s962_s2] sm:$0xff] }
   0x5   :  { %698 = vmatprep.subr.mxu1 %v30_v3  ;;  %688 = vmatpush3.msra.mxu0 %v619_v2  ;;  %v857_v8 = vld [vmem:[%s961_s1] sm:$0xff] }
   0x6   :  { %699 = vmatpush3.msra.mxu1 %v30_v3  ;;  %689 = vmatprep.subr.mxu0 %v618_v4  ;;  %v862_v9 = vld [vmem:[%s960_s0] sm:$0xff] }
   0x7   :  { %700 = vmatprep.subr.mxu1 %v29_v5  ;;  %690 = vmatpush3.msra.mxu0 %v618_v4 }
   0x8   :  { %701 = vmatpush3.msra.mxu1 %v29_v5 }
   0x9   :  { %11 = vsyncpa [#allocation3], 0  ;;  %691 = vmatprep.subr.mxu0 %v617_v6  ;;  %702 = vmatprep.subr.mxu1 %v28_v7  ;;  %v867_v10 = vld [vmem:[%s961_s1 + $0x8] sm:$0xff]  ;;  %v633_v12 = vld [vmem:[%s962_s2 + $0x78] sm:$0xff]  ;;  %s792_s28 = smov [#allocation2]  }
   0xa   :  { %v872_v11 = vld [vmem:[%s960_s0 + $0x8] sm:$0xff]  ;;  %692 = vmatpush3.msra.mxu0 %v617_v6  ;;  %693 = vmatprep.mubr.msk.f32.mxu0 %vm37_vm0, %v857_v8  ;;  %v629_v13 = vld [vmem:[%s962_s2 + $0x38] sm:$0xff]  ;;  %v632_v14 = vld [vmem:[%s962_s2 + $0x70] sm:$0xff]  ;;  %s606_s29 = sshll.u32 %s792_s28, 4  ;;  %s607_s29 = int_to_ptr.vmem [resolvable:$true] %s606_s29 }
   0xb   :  { %703 = vmatpush3.msra.mxu1 %v28_v7  ;;  %704 = vmatprep.mubr.msk.f32.mxu1 %vm37_vm0, %v862_v9  ;;  %v628_v15 = vld [vmem:[%s962_s2 + $0x30] sm:$0xff]  ;;  %v631_v16 = vld [vmem:[%s962_s2 + $0x68] sm:$0xff]  ;;  %v630_v18 = vld [vmem:[%s962_s2 + $0x60] sm:$0xff]  ;;  %s770_s30 = scalar_lea.vmem %s607_s29, 256  ;;  %p775_p1 = scmp.lt.s32.totalorder %s607_s29, %s607_s29 }
   0xc   :  { %694 = vmatmul.mubr.msk.f32.vlgmr.msra.gmra.mxu0 %vm37_vm0, %v867_v10  ;;  %705 = vmatmul.mubr.msk.f32.vlgmr.msra.gmra.mxu1 %vm37_vm0, %v872_v11  ;;  %v627_v17 = vld [vmem:[%s962_s2 + $0x28] sm:$0xff]  ;;  %v626_v19 = vld [vmem:[%s962_s2 + $0x20] sm:$0xff]  ;;  %v422_v20 = vld [vmem:[%s964_s4 + $0x18] sm:$0xff]  ;;  %p771_p0 = scmp.ne.s32.totalorder %s607_s29, %s770_s30  ;;  %p776_p2 = scmp.lt.s32.totalorder %s770_s30, %s770_s30 }
   0xd   :  { %707 = vmatprep.subr.mxu0 %v633_v12  ;;  %718 = vmatprep.subr.mxu1 %v629_v13  ;;  %v421_v21 = vld [vmem:[%s964_s4 + $0x10] sm:$0xff]  ;;  %v420_v22 = vld [vmem:[%s964_s4 + $0x8] sm:$0xff]  ;;  %v419_v23 = vld [vmem:[%s964_s4] sm:$0xff] }
   0xe   :  { %708 = vmatpush3.msra.mxu0 %v633_v12  ;;  %719 = vmatpush3.msra.mxu1 %v629_v13  ;;  %v643_v24 = vld [vmem:[%s964_s4 + $0x38] sm:$0xff]  ;;  %v642_v25 = vld [vmem:[%s964_s4 + $0x30] sm:$0xff]  ;;  %v641_v26 = vld [vmem:[%s964_s4 + $0x28] sm:$0xff]  ;;  %p777_p3 = por %p776_p2, %p775_p1 }
   0xf   :  { %709 = vmatprep.subr.mxu0 %v632_v14  ;;  %720 = vmatprep.subr.mxu1 %v628_v15  ;;  %v640_v27 = vld [vmem:[%s964_s4 + $0x20] sm:$0xff] }
  0x10   :  { %710 = vmatpush3.msra.mxu0 %v632_v14  ;;  %721 = vmatpush3.msra.mxu1 %v628_v15  ;;  %v625_v30 = vld [vmem:[%s963_s3] ss:$0 sm:$0xff]  ;;  %v639_v43 = vld [vmem:[%s963_s3 + $0x1] ss:$0 sm:$0xff]  ;;  %p778_p4 = pnand %p777_p3, %p771_p0 }
  0x11   :  { %711 = vmatprep.subr.mxu0 %v631_v16  ;;  %722 = vmatprep.subr.mxu1 %v627_v17 }
  0x12   :  { %712 = vmatpush3.msra.mxu0 %v631_v16  ;;  %723 = vmatpush3.msra.mxu1 %v627_v17 }
  0x13   :  { %713 = vmatprep.subr.mxu0 %v630_v18  ;;  %724 = vmatprep.subr.mxu1 %v626_v19 }
  0x14   :  { %714 = vmatpush3.msra.mxu0 %v630_v18  ;;  %715 = vmatprep.mubr.msk.f32.mxu0 %vm37_vm0, %v857_v8 }
  0x15   :  { %725 = vmatpush3.msra.mxu1 %v626_v19  ;;  %726 = vmatprep.mubr.msk.f32.mxu1 %vm37_vm0, %v862_v9 }
  0x16   :  { %716 = vmatmul.mubr.msk.f32.vlgmr.msra.gmra.mxu0 %vm37_vm0, %v867_v10  ;;  %727 = vmatmul.mubr.msk.f32.vlgmr.msra.gmra.mxu1 %vm37_vm0, %v872_v11 }
  0x17   :  { %740 = vmatprep.subr.mxu1 %v422_v20  ;;  %729 = vmatprep.subr.mxu0 %v643_v24 }
  0x18   :  { %741 = vmatpush3.msra.mxu1 %v422_v20  ;;  %730 = vmatpush3.msra.mxu0 %v643_v24 }
  0x19   :  { %742 = vmatprep.subr.mxu1 %v421_v21  ;;  %731 = vmatprep.subr.mxu0 %v642_v25 }
  0x1a   :  { %743 = vmatpush3.msra.mxu1 %v421_v21  ;;  %732 = vmatpush3.msra.mxu0 %v642_v25 }
  0x1b   :  { %744 = vmatprep.subr.mxu1 %v420_v22  ;;  %733 = vmatprep.subr.mxu0 %v641_v26 }
  0x1c   :  { %745 = vmatpush3.msra.mxu1 %v420_v22  ;;  %734 = vmatpush3.msra.mxu0 %v641_v26  ;;  %v648_v26 = vld [vmem:[%s965_s5] ss:$0 sm:$0xff] }
  0x1d   :  { %746 = vmatprep.subr.mxu1 %v419_v23  ;;  %735 = vmatprep.subr.mxu0 %v640_v27 }
  0x1e   :  { %747 = vmatpush3.msra.mxu1 %v419_v23  ;;  %736 = vmatpush3.msra.mxu0 %v640_v27 }
  0xcc   :  { %v695_v28 = vpop.f32.mrf.mxu0  ;;  %v706_v29 = vpop.f32.mrf.mxu1 }
  0xcd   :  { %v197_v31 = vadd.f32 %v706_v29, %v695_v28 }
  0xce   :  { %v110_v32 = vpop.f32.mrf.mxu0  ;;  %v191_v33 = vpop.f32.mrf.mxu1 }
  0xcf   :  { %v208_v34 = vadd.f32 %v625_v30, %v197_v31  ;;  %v192_v35 = vadd.f32 %v191_v33, %v110_v32 }
  0xd1   :  { %v380_v36 = vmin.f32 %v208_v34, 20.0  ;;  %v207_v37 = vadd.f32 %v625_v30, %v192_v35 }
  0xd3   :  { %v383_v38 = vmul.f32 1.442695, %v380_v36  ;;  %v379_v39 = vmin.f32 %v207_v37, 20.0 }
  0xd5   :  { %754 = vpow2.f32 %v383_v38  ;;  %v381_v40 = vmul.f32 1.442695, %v379_v39 }
  0xd6   :  { %v717_v41 = vpop.f32.mrf.mxu0  ;;  %v728_v42 = vpop.f32.mrf.mxu1 }
  0xd7   :  { %756 = vpow2.f32 %v381_v40  ;;  %v366_v44 = vadd.f32 %v728_v42, %v717_v41 }
  0xd8   :  { %v285_v45 = vpop.f32.mrf.mxu0  ;;  %v360_v46 = vpop.f32.mrf.mxu1 }
  0xd9   :  { %v378_v47 = vadd.f32 %v639_v43, %v366_v44  ;;  %v361_v48 = vadd.f32 %v360_v46, %v285_v45 }
  0xdb   :  { %v400_v49 = vmin.f32 %v378_v47, 20.0  ;;  %v377_v50 = vadd.f32 %v639_v43, %v361_v48 }
  0xdd   :  { %v403_v51 = vmul.f32 1.442695, %v400_v49  ;;  %v399_v52 = vmin.f32 %v377_v50, 20.0 }
  0xdf   :  { %758 = vpow2.f32 %v403_v51  ;;  %v401_v53 = vmul.f32 1.442695, %v399_v52 }
  0xe1   :  { %760 = vpow2.f32 %v401_v53 }
  0xe2   :  { %v755_v54 = vpop.eup %754 }
  0xe3   :  { %v386_v55 = vadd.f32 2.0, %v755_v54 }
  0xe4   :  { %v757_v56 = vpop.eup %756 }
  0xe5   :  { %v388_v57 = vmul.f32 %v755_v54, %v386_v55  ;;  %v385_v58 = vadd.f32 2.0, %v757_v56 }
  0xe7   :  { %v392_v59 = vadd.f32 2.0, %v388_v57  ;;  %v387_v60 = vmul.f32 %v757_v56, %v385_v58  ;;  %v390_v7 = vmul.f32 %v388_v57, %v208_v34 }
  0xe9   :  { %762 = vrcp.f32 %v392_v59  ;;  %v391_v61 = vadd.f32 2.0, %v387_v60  ;;  %v389_v12 = vmul.f32 %v387_v60, %v207_v37 }
  0xeb   :  { %764 = vrcp.f32 %v391_v61 }
  0xec   :  { %v759_v62 = vpop.eup %758 }
  0xed   :  { %v406_v63 = vadd.f32 2.0, %v759_v62 }
  0xee   :  { %v761_v0 = vpop.eup %760 }
  0xef   :  { %v408_v1 = vmul.f32 %v759_v62, %v406_v63  ;;  %v405_v2 = vadd.f32 2.0, %v761_v0 }
  0xf1   :  { %v412_v3 = vadd.f32 2.0, %v408_v1  ;;  %v407_v4 = vmul.f32 %v761_v0, %v405_v2  ;;  %v410_v19 = vmul.f32 %v408_v1, %v378_v47 }
  0xf3   :  { %766 = vrcp.f32 %v412_v3  ;;  %v411_v5 = vadd.f32 2.0, %v407_v4  ;;  %v409_v20 = vmul.f32 %v407_v4, %v377_v50 }
  0xf5   :  { %768 = vrcp.f32 %v411_v5 }
  0xf6   :  { %v763_v6 = vpop.eup %762 }
  0xf7   :  { %v396_v14 = vmul.f32 %v763_v6, %v390_v7 }
  0xf8   :  { %v765_v13 = vpop.eup %764 }
  0xf9   :  { %v394_v15 = vmul.f32 %v765_v13, %v389_v12  ;;  %v398_v17 = vadd.f32 %v396_v14, %v872_v11 }
  0xfb   :  { %v397_v16 = vadd.f32 %v394_v15, %v862_v9 }
  0xfd   :  { %748 = vmatprep.mubr.msk.f32.mxu1 %vm37_vm0, %v397_v16 }
  0xfe   :  { %749 = vmatmul.mubr.msk.f32.vlgmr.msra.gmra.mxu1 %vm37_vm0, %v398_v17 }
 0x100   :  { %v767_v18 = vpop.eup %766 }
 0x101   :  { %v416_v22 = vmul.f32 %v767_v18, %v410_v19 }
 0x102   :  { %v769_v21 = vpop.eup %768 }
 0x103   :  { %v414_v23 = vmul.f32 %v769_v21, %v409_v20  ;;  %v418_v25 = vadd.f32 %v416_v22, %v867_v10 }
 0x105   :  { %v417_v24 = vadd.f32 %v414_v23, %v857_v8 }
 0x107   :  { %737 = vmatprep.mubr.msk.f32.mxu0 %vm37_vm0, %v417_v24 }
 0x108   :  { %738 = vmatmul.mubr.msk.f32.vlgmr.msra.gmra.mxu0 %vm37_vm0, %v418_v25 }
 0x1be   :  { %v750_v9 = vpop.f32.mrf.mxu1 }
 0x1c0   :  { %v581_v28 = vpop.f32.mrf.mxu1 }
 0x1c8   :  { %v739_v11 = vpop.f32.mrf.mxu0 }
 0x1c9   :  { %v587_v27 = vadd.f32 %v750_v9, %v739_v11 }
 0x1ca   :  { %v500_v29 = vpop.f32.mrf.mxu0 }
 0x1cb   :  { %v598_v30 = vadd.f32 %v648_v26, %v587_v27  ;;  %v582_v31 = vadd.f32 %v581_v28, %v500_v29 }
 0x1cd   :  { %600 = vst.msk [vmem:[#allocation2 + $0x8] sm:$0xff] %vm37_vm0, %v598_v30  ;;  %v597_v8 = vadd.f32 %v648_v26, %v582_v31 }
 0x1cf   :  { %599 = vst.msk [vmem:[#allocation2] sm:$0xff] %vm37_vm0, %v597_v8 }
 0x1d0   :  { %781 = shalt.err (!%p778_p4)
}
 0x1d1   :  { %s793_s5 = smov 128   ;;  %s794_s7 = smov 8  }
 0x1d2   :  { %612 = dma.vmem_to_hbm [thread:$0]  %s607_s29, 256, %s966_s6, [#allocation3], %s793_s5, %s793_s5, %s794_s7  }
 0x1d3   :  { %790 = dma.done.wait [#allocation3], 256  }
 0x1d4   :  { %791 = vsyncadd [#allocation3], 4294967040 }
 0x1d5   :  { %616 = vsyncpa [#allocation3], 1 }

// kernel: fwd.16
= control target key start
LH: loop header
LB: loop body
LE: loop exit
PB: predicated region body
PF: predicated region fallthrough
CT: control target
= control target key end

     0   :  { %s1206_s0 = inlined_call_operand.vmem [shape: s32[16], index: 0, kind: input, shape index: {}]   ;;  %s1207_s1 = inlined_call_operand.vmem [shape: f32[16,32], index: 1, kind: input, shape index: {}]   ;;  %s1208_s2 = inlined_call_operand.vmem [shape: f32[2,2,32,32], index: 2, kind: input, shape index: {}]   ;;  %s1209_s3 = inlined_call_operand.vmem [shape: f32[2,1,32], index: 3, kind: input, shape index: {}]   ;;  %s1210_s4 = inlined_call_operand.vmem [shape: f32[2,2,32,32], index: 4, kind: input, shape index: {}]   ;;  %s1211_s5 = inlined_call_operand.vmem [shape: f32[2,1,32], index: 5, kind: input, shape index: {}]   ;;  %s1212_s6 = inlined_call_operand.vmem [shape: f32[2,8,32], index: 6, kind: output, shape index: {}]  }
   0x1   :  { %s11_s23 = sshll.u32 %s1206_s0, 4  ;;  %s12_s23 = int_to_ptr.vmem [resolvable:$true] %s11_s23 }
   0x2   :  { %s945_s24 = scalar_lea.vmem %s12_s23, 16  ;;  %p950_p1 = scmp.lt.s32.totalorder %s12_s23, %s12_s23 }
   0x3   :  { %p946_p0 = scmp.ne.s32.totalorder %s12_s23, %s945_s24  ;;  %p951_p2 = scmp.lt.s32.totalorder %s945_s24, %s945_s24 }
   0x5   :  { %p952_p3 = por %p951_p2, %p950_p1 }
   0x7   :  { %p953_p4 = pnand %p952_p3, %p946_p0 }
   0x9   :  { %956 = shalt.err (!%p953_p4)  }
   0xa   :  { %s975_s25 = smov [#allocation5]  }
   0xb   :  { %14 = dma.vmem_to_smem %s12_s23, 16, %s975_s25, [#allocation4] }
   0xc   :  { %965 = dma.done.wait [#allocation4], 16 }
   0xd   :  { %966 = vsyncadd [#allocation4], 4294967280 }
   0xe   :  { %16 = sfence }
   0xf   :  { %s967_s26 = smov 0  }
  0x10 LB: > { %s749_s27 = sshll.u32 %s969_s26, 1  ;;  %vm40_vm0 = vcmask 253952   ;;  %s39_s7 = scalar_lea.vmem [#allocation2], %s969_s26  ;;  %s969_s26 = sphi %s967_s26, %s33_s26  }
  0x11   : > { %s36_s28 = sld [smem:[#allocation5 + %s749_s27]]  ;;  %s33_s26 = sadd.s32 1, %s969_s26  }
  0x12   : > { %p30_p5 = scmp.ge.s32.totalorder %s33_s26, 8  }
  0x13   :  { %s971_s8 = smov (%p30_p5), 0  }
  0x15   :  { %32 = sbr.rel (!%p30_p5) target bundleno = 16 (0x10), region = 67 }
  0x17   : > { %s37_s30 = scalar_lea.vmem %s1207_s1, %s36_s28 }
  0x18   : > { %v38_v0 = vld [vmem:[%s37_s30] sm:$0x1] }
  0x19   : > { %41 = vst.msk [vmem:[%s39_s7] sm:$0x1] %vm40_vm0, %v38_v0 }
  0x1a LB: > { %s750_s9 = sshll.u32 %s973_s8, 1  ;;  %s54_s15 = scalar_lea.vmem [#allocation3], %s973_s8  ;;  %s973_s8 = sphi %s971_s8, %s47_s8  }
  0x1b   : > { %s50_s10 = sadd.s32 1, %s750_s9  ;;  %s47_s8 = sadd.s32 1, %s973_s8  }
  0x1c   : > { %s51_s11 = sld [smem:[#allocation5 + %s50_s10]]  ;;  %p44_p6 = scmp.ge.s32.totalorder %s47_s8, 8  }
  0x1d   :  { %v63_v2 = vld [vmem:[%s1208_s2 + $0x18] sm:$0xff] (%p44_p6)  ;;  %v976_v4 = vmov (%p44_p6), 0.0   ;;  %v62_v5 = vld [vmem:[%s1208_s2 + $0x10] sm:$0xff] (%p44_p6)  ;;  %v61_v7 = vld [vmem:[%s1208_s2 + $0x8] sm:$0xff] (%p44_p6)  ;;  %vm64_vm1 = vcmask (%p44_p6), 261120   ;;  %vm977_vm2 = vmmov (%p44_p6), 0  }
  0x1e   :  { %v756_v3 = vld [vmem:[%s1208_s2 + $0x58] sm:$0xff] (%p44_p6)  ;;  %830 = vmatprep.subr.mxu0 (%p44_p6), %v976_v4  ;;  %841 = vmatprep.subr.mxu1 (%p44_p6), %v976_v4  ;;  %v755_v6 = vld [vmem:[%s1208_s2 + $0x50] sm:$0xff] (%p44_p6)  ;;  %v754_v8 = vld [vmem:[%s1208_s2 + $0x48] sm:$0xff] (%p44_p6) }
  0x1f   :  { %831 = vmatpush3.msra.mxu0 (%p44_p6), %v63_v2  ;;  %842 = vmatpush3.msra.mxu1 (%p44_p6), %v756_v3  ;;  %v60_v9 = vld [vmem:[%s1208_s2] sm:$0xff] (%p44_p6)  ;;  %v762_v13 = vld [vmem:[%s1208_s2 + $0x38] sm:$0xff] (%p44_p6)  ;;  %v761_v15 = vld [vmem:[%s1208_s2 + $0x30] sm:$0xff] (%p44_p6) }
  0x20   :  { %46 = sbr.rel (!%p44_p6) target bundleno = 26 (0x1a), region = 78  ;;  %832 = vmatprep.subr.mxu0 (%p44_p6), %v976_v4  ;;  %843 = vmatprep.subr.mxu1 (%p44_p6), %v976_v4  ;;  %v753_v10 = vld [vmem:[%s1208_s2 + $0x40] sm:$0xff] (%p44_p6)  ;;  %v768_v14 = vld [vmem:[%s1208_s2 + $0x78] sm:$0xff] (%p44_p6)  ;;  %v767_v16 = vld [vmem:[%s1208_s2 + $0x70] sm:$0xff] (%p44_p6) }
  0x21   :  { %833 = vmatpush3.msra.mxu0 (%p44_p6), %v62_v5  ;;  %844 = vmatpush3.msra.mxu1 (%p44_p6), %v755_v6  ;;  %v1054_v11 = vld [vmem:[#allocation2] sm:$0xff] (%p44_p6)  ;;  %v760_v17 = vld [vmem:[%s1208_s2 + $0x28] sm:$0xff] (%p44_p6)  ;;  %v408_v21 = vld [vmem:[%s1210_s4 + $0x18] sm:$0xff] (%p44_p6) }
  0x22   : > { %s52_s14 = scalar_lea.vmem %s1207_s1, %s51_s11  ;;  %834 = vmatprep.subr.mxu0 (%p44_p6), %v976_v4  ;;  %845 = vmatprep.subr.mxu1 (%p44_p6), %v976_v4  ;;  %v766_v18 = vld [vmem:[%s1208_s2 + $0x68] sm:$0xff] (%p44_p6)  ;;  %v759_v19 = vld [vmem:[%s1208_s2 + $0x20] sm:$0xff] (%p44_p6)  ;;  %v407_v22 = vld [vmem:[%s1210_s4 + $0x10] sm:$0xff] (%p44_p6) }
  0x23   : > { %v53_v1 = vld [vmem:[%s52_s14] sm:$0x1]  ;;  %835 = vmatpush3.msra.mxu0 (%p44_p6), %v61_v7  ;;  %846 = vmatpush3.msra.mxu1 (%p44_p6), %v754_v8  ;;  %v406_v23 = vld [vmem:[%s1210_s4 + $0x8] sm:$0xff] (%p44_p6)  ;;  %v775_v25 = vld [vmem:[%s1210_s4 + $0x58] sm:$0xff] (%p44_p6) }
  0x24   : > { %56 = vst.msk [vmem:[%s54_s15] sm:$0x1] %vm40_vm0, %v53_v1  ;;  %836 = vmatprep.subr.mxu0 (%p44_p6), %v976_v4  ;;  %847 = vmatprep.subr.mxu1 (%p44_p6), %v976_v4  ;;  %v765_v20 = vld [vmem:[%s1208_s2 + $0x60] sm:$0xff] (%p44_p6)  ;;  %v774_v26 = vld [vmem:[%s1210_s4 + $0x50] sm:$0xff] (%p44_p6)  ;;  %v773_v27 = vld [vmem:[%s1210_s4 + $0x48] sm:$0xff] (%p44_p6) }
  0x25   :  { %837 = vmatpush3.msra.mxu0 %v60_v9  ;;  %838 = vmatprep.mubr.msk.f32.mxu0 %vm977_vm2, %v976_v4  ;;  %v405_v24 = vld [vmem:[%s1210_s4] sm:$0xff]  ;;  %v781_v59 = vld [vmem:[%s1210_s4 + $0x38] sm:$0xff]  ;;  %v780_v60 = vld [vmem:[%s1210_s4 + $0x30] sm:$0xff] }
  0x26   :  { %848 = vmatpush3.msra.mxu1 %v753_v10  ;;  %839 = vmatmul.mubr.msk.f32.vlgmr.msra.gmra.mxu0 %vm64_vm1, %v1054_v11  ;;  %v772_v28 = vld [vmem:[%s1210_s4 + $0x40] sm:$0xff]  ;;  %v779_v61 = vld [vmem:[%s1210_s4 + $0x28] sm:$0xff]  ;;  %v787_v3 = vld [vmem:[%s1210_s4 + $0x78] sm:$0xff] }
  0x27   :  { %849 = vmatprep.mubr.msk.f32.mxu1 %vm977_vm2, %v976_v4  ;;  %852 = vmatprep.subr.mxu0 %v976_v4  ;;  %v752_v29 = vld [vmem:[%s1209_s3] ss:$0 sm:$0xff]  ;;  %v764_v38 = vld [vmem:[%s1209_s3 + $0x1] ss:$0 sm:$0xff]  ;;  %v786_v5 = vld [vmem:[%s1210_s4 + $0x70] sm:$0xff] }
  0x28   :  { %863 = vmatprep.subr.mxu1 %v976_v4  ;;  %853 = vmatpush3.msra.mxu0 %v762_v13  ;;  %v778_v62 = vld [vmem:[%s1210_s4 + $0x20] sm:$0xff]  ;;  %v785_v6 = vld [vmem:[%s1210_s4 + $0x68] sm:$0xff] }
  0x29   :  { %854 = vmatprep.subr.mxu0 %v976_v4  ;;  %860 = vmatprep.mubr.msk.f32.mxu0 %vm977_vm2, %v976_v4  ;;  %v784_v7 = vld [vmem:[%s1210_s4 + $0x60] sm:$0xff] }
  0x2a   :  { %855 = vmatpush3.msra.mxu0 %v761_v15  ;;  %v771_v10 = vld [vmem:[%s1211_s5] ss:$0 sm:$0xff] }
  0x2b   :  { %v1060_v12 = vld [vmem:[#allocation3] sm:$0xff]  ;;  %856 = vmatprep.subr.mxu0 %v976_v4 }
  0x2c   :  { %850 = vmatmul.mubr.msk.f32.vlgmr.msra.gmra.mxu1 %vm64_vm1, %v1060_v12  ;;  %857 = vmatpush3.msra.mxu0 %v760_v17 }
  0x2d   :  { %864 = vmatpush3.msra.mxu1 %v768_v14  ;;  %858 = vmatprep.subr.mxu0 %v976_v4 }
  0x2e   :  { %865 = vmatprep.subr.mxu1 %v976_v4  ;;  %859 = vmatpush3.msra.mxu0 %v759_v19 }
  0x2f   :  { %866 = vmatpush3.msra.mxu1 %v767_v16  ;;  %871 = vmatprep.mubr.msk.f32.mxu1 %vm977_vm2, %v976_v4 }
  0x30   :  { %867 = vmatprep.subr.mxu1 %v976_v4  ;;  %861 = vmatmul.mubr.msk.f32.vlgmr.msra.gmra.mxu0 %vm64_vm1, %v1054_v11 }
  0x31   :  { %868 = vmatpush3.msra.mxu1 %v766_v18  ;;  %874 = vmatprep.subr.mxu0 %v976_v4 }
  0x32   :  { %869 = vmatprep.subr.mxu1 %v976_v4  ;;  %882 = vmatprep.mubr.msk.f32.mxu0 %vm977_vm2, %v976_v4 }
  0x33   :  { %870 = vmatpush3.msra.mxu1 %v765_v20  ;;  %875 = vmatpush3.msra.mxu0 %v408_v21 }
  0x34   :  { %872 = vmatmul.mubr.msk.f32.vlgmr.msra.gmra.mxu1 %vm64_vm1, %v1060_v12  ;;  %885 = vmatprep.subr.mxu1 %v976_v4 }
  0x35   :  { %893 = vmatprep.mubr.msk.f32.mxu1 %vm977_vm2, %v976_v4  ;;  %876 = vmatprep.subr.mxu0 %v976_v4 }
  0x36   :  { %877 = vmatpush3.msra.mxu0 %v407_v22  ;;  %886 = vmatpush3.msra.mxu1 %v775_v25 }
  0x37   :  { %878 = vmatprep.subr.mxu0 %v976_v4  ;;  %887 = vmatprep.subr.mxu1 %v976_v4 }
  0x38   :  { %879 = vmatpush3.msra.mxu0 %v406_v23  ;;  %888 = vmatpush3.msra.mxu1 %v774_v26 }
  0x39   :  { %880 = vmatprep.subr.mxu0 %v976_v4  ;;  %889 = vmatprep.subr.mxu1 %v976_v4 }
  0x3a   :  { %881 = vmatpush3.msra.mxu0 %v405_v24  ;;  %890 = vmatpush3.msra.mxu1 %v773_v27 }
  0x3b   :  { %896 = vmatprep.subr.mxu0 %v976_v4  ;;  %891 = vmatprep.subr.mxu1 %v976_v4 }
  0x3c   :  { %892 = vmatpush3.msra.mxu1 %v772_v28 }
  0x3d   :  { %907 = vmatprep.subr.mxu1 %v976_v4 }
  0xe6   :  { %v134_v30 = vpop.f32.mrf.mxu0 }
  0xe7   :  { %v144_v31 = vadd.f32 %v752_v29, %v134_v30 }
  0xe8   :  { %v840_v33 = vpop.f32.mrf.mxu0 }
  0xec   :  { %v219_v32 = vpop.f32.mrf.mxu1 }
  0xed   :  { %v223_v34 = vadd.f32 %v219_v32, %v144_v31 }
  0xee   :  { %v851_v35 = vpop.f32.mrf.mxu1 }
  0xef   :  { %v224_v36 = vmin.f32 %v223_v34, 20.0 }
  0xf0   :  { %v307_v39 = vpop.f32.mrf.mxu0 }
  0xf1   :  { %v225_v37 = vmul.f32 1.442695, %v224_v36  ;;  %v317_v41 = vadd.f32 %v764_v38, %v307_v39 }
  0xf2   :  { %v862_v42 = vpop.f32.mrf.mxu0 }
  0xf3   :  { %937 = vpow2.f32 %v225_v37 }
  0xf4   :  { %v389_v40 = vpop.f32.mrf.mxu1 }
  0xf5   :  { %v393_v44 = vadd.f32 %v389_v40, %v317_v41 }
  0xf6   :  { %v873_v43 = vpop.f32.mrf.mxu1 }
  0xf7   :  { %v394_v45 = vmin.f32 %v393_v44, 20.0 }
  0xf9   :  { %v395_v46 = vmul.f32 1.442695, %v394_v45 }
  0xfb   :  { %939 = vpow2.f32 %v395_v46 }
 0x100   :  { %v938_v47 = vpop.eup %937 }
 0x101   :  { %v227_v48 = vadd.f32 2.0, %v938_v47 }
 0x103   :  { %v228_v49 = vmul.f32 %v938_v47, %v227_v48 }
 0x105   :  { %v230_v50 = vadd.f32 2.0, %v228_v49  ;;  %v229_v55 = vmul.f32 %v228_v49, %v223_v34 }
 0x107   :  { %941 = vrcp.f32 %v230_v50 }
 0x108   :  { %v940_v51 = vpop.eup %939 }
 0x109   :  { %v397_v52 = vadd.f32 2.0, %v940_v51 }
 0x10b   :  { %v398_v53 = vmul.f32 %v940_v51, %v397_v52 }
 0x10d   :  { %v400_v54 = vadd.f32 2.0, %v398_v53  ;;  %v399_v63 = vmul.f32 %v398_v53, %v393_v44 }
 0x10f   :  { %943 = vrcp.f32 %v400_v54 }
 0x114   :  { %v942_v56 = vpop.eup %941 }
 0x115   :  { %v232_v57 = vmul.f32 %v942_v56, %v229_v55 }
 0x117   :  { %v233_v58 = vadd.f32 %v232_v57, %v1054_v11 }
 0x119   :  { %883 = vmatmul.mubr.msk.f32.vlgmr.msra.gmra.mxu0 %vm64_vm1, %v233_v58 }
 0x11a   :  { %897 = vmatpush3.msra.mxu0 %v781_v59  ;;  %904 = vmatprep.mubr.msk.f32.mxu0 %vm977_vm2, %v976_v4 }
 0x11b   :  { %898 = vmatprep.subr.mxu0 %v976_v4 }
 0x11c   :  { %899 = vmatpush3.msra.mxu0 %v780_v60  ;;  %v944_v0 = vpop.eup %943 }
 0x11d   :  { %900 = vmatprep.subr.mxu0 %v976_v4  ;;  %v402_v1 = vmul.f32 %v944_v0, %v399_v63 }
 0x11e   :  { %901 = vmatpush3.msra.mxu0 %v779_v61 }
 0x11f   :  { %902 = vmatprep.subr.mxu0 %v976_v4  ;;  %v403_v2 = vadd.f32 %v402_v1, %v1060_v12 }
 0x120   :  { %903 = vmatpush3.msra.mxu0 %v778_v62 }
 0x121   :  { %905 = vmatmul.mubr.msk.f32.vlgmr.msra.gmra.mxu0 %vm64_vm1, %v233_v58  ;;  %894 = vmatmul.mubr.msk.f32.vlgmr.msra.gmra.mxu1 %vm64_vm1, %v403_v2 }
 0x122   :  { %908 = vmatpush3.msra.mxu1 %v787_v3  ;;  %915 = vmatprep.mubr.msk.f32.mxu1 %vm977_vm2, %v976_v4 }
 0x123   :  { %909 = vmatprep.subr.mxu1 %v976_v4 }
 0x124   :  { %910 = vmatpush3.msra.mxu1 %v786_v5 }
 0x125   :  { %911 = vmatprep.subr.mxu1 %v976_v4 }
 0x126   :  { %912 = vmatpush3.msra.mxu1 %v785_v6 }
 0x127   :  { %913 = vmatprep.subr.mxu1 %v976_v4  ;;  %v783_v4 = vld [vmem:[%s1211_s5 + $0x1] ss:$0 sm:$0xff] }
 0x128   :  { %914 = vmatpush3.msra.mxu1 %v784_v7 }
 0x129   :  { %916 = vmatmul.mubr.msk.f32.vlgmr.msra.gmra.mxu1 %vm64_vm1, %v403_v2 }
 0x1d9   :  { %v478_v8 = vpop.f32.mrf.mxu0 }
 0x1da   :  { %v488_v12 = vadd.f32 %v771_v10, %v478_v8 }
 0x1db   :  { %v884_v9 = vpop.f32.mrf.mxu0 }
 0x1e1   :  { %v642_v11 = vpop.f32.mrf.mxu0  ;;  %v563_v14 = vpop.f32.mrf.mxu1 }
 0x1e2   :  { %v567_v15 = vadd.f32 %v563_v14, %v488_v12  ;;  %v652_v17 = vadd.f32 %v783_v4, %v642_v11 }
 0x1e3   :  { %v906_v13 = vpop.f32.mrf.mxu0  ;;  %v895_v16 = vpop.f32.mrf.mxu1 }
 0x1e4   :  { %568 = vst.msk [vmem:[%s1212_s6] sm:$0xff] %vm64_vm1, %v567_v15 }
 0x1e9   :  { %v724_v18 = vpop.f32.mrf.mxu1 }
 0x1ea   :  { %v728_v19 = vadd.f32 %v724_v18, %v652_v17 }
 0x1eb   :  { %v917_v20 = vpop.f32.mrf.mxu1 }
 0x1ec   :  { %789 = vst.msk [vmem:[%s1212_s6 + $0x8] sm:$0xff] %vm64_vm1, %v728_v19 }

</bundles_post_ra>
